<compile_context>
chip_gen: v7x
topology: tpu7x:2x2x1
jax: 0.10.0
libtpu: 0.0.40
codegen_flags: <defaults>
</compile_context>

<pallas_src>
import math

import jax
import jax.numpy as jnp
from jax.experimental import pallas as pl
from jax.experimental.pallas import tpu as pltpu


def _mix_u32(x):
    """splitmix32-style avalanche mix on uint32."""
    x = x ^ (x >> jnp.uint32(16))
    x = x * jnp.uint32(0x7FEB352D)
    x = x ^ (x >> jnp.uint32(15))
    x = x * jnp.uint32(0x846CA68B)
    x = x ^ (x >> jnp.uint32(16))
    return x


def _sampler_kernel(seed_ref, mu_ref, logvar_ref, out_ref):
    block_r, block_n = mu_ref.shape
    # Dual-output Box-Muller needs each half of the last dim to stay a
    # multiple of 128 lanes.
    dual = (block_n % 256 == 0)
    ncols = block_n // 2 if dual else block_n

    # Global (tiling-invariant) index of each (u1, u2) pair.
    row0 = pl.program_id(0) * block_r
    r_idx = jax.lax.broadcasted_iota(jnp.int32, (block_r, ncols), 0) + row0
    c_idx = jax.lax.broadcasted_iota(jnp.int32, (block_r, ncols), 1)
    pair_idx = (r_idx * ncols + c_idx).astype(jnp.uint32)

    seed = seed_ref[0].astype(jnp.uint32)
    salt1 = _mix_u32(seed + jnp.uint32(0x243F6A88))
    salt2 = _mix_u32(seed + jnp.uint32(0x85A308D3))

    def uniform_open0_closed1(salt):
        bits = _mix_u32(pair_idx * jnp.uint32(0x9E3779B9) + salt)
        # top 24 bits -> [0, 1), flip to (0, 1] so log() stays finite.
        m = (bits >> jnp.uint32(8)).astype(jnp.int32).astype(jnp.float32)
        return 1.0 - m * jnp.float32(1.0 / 16777216.0)

    u1 = uniform_open0_closed1(salt1)
    u2 = uniform_open0_closed1(salt2)

    # Box-Muller transform.
    r = jnp.sqrt(-2.0 * jnp.log(u1))
    theta = jnp.float32(2.0 * math.pi) * u2
    if dual:
        eps = jnp.concatenate([r * jnp.cos(theta), r * jnp.sin(theta)], axis=-1)
    else:
        eps = r * jnp.cos(theta)

    mu = mu_ref[...].astype(jnp.float32)
    lv = logvar_ref[...].astype(jnp.float32)
    out_ref[...] = (eps * jnp.exp(0.5 * lv) + mu).astype(out_ref.dtype)


def sampler(inputs, seed=0):
    """inputs = (mu, logvar), same shape/dtype.  Returns eps*exp(0.5*logvar)+mu."""
    mu, logvar = inputs[0], inputs[1]
    assert mu.shape == logvar.shape
    orig_shape = mu.shape
    dtype = mu.dtype
    total = math.prod(orig_shape)

    # Lane-dense 2D view: last dim a big multiple of 128 when possible.
    block_n = None
    for cand in (2048, 1024, 512, 256, 128):
        if total % cand == 0:
            block_n = cand
            break
    if block_n is None:
        block_n = orig_shape[-1]          # fallback: keep the original last dim
    rows = total // block_n

    # Target ~2 MiB (f32) per block; keep the row tile a multiple of 8 unless
    # it is the full extent, so the (8, 128) block constraint always holds.
    target_rows = max(8, ((2 * 1024 * 1024) // (4 * block_n)) // 8 * 8)
    block_r = rows if rows <= target_rows else target_rows
    grid = (pl.cdiv(rows, block_r),)

    mu2 = mu.reshape(rows, block_n)
    lv2 = logvar.reshape(rows, block_n)
    seed_arr = jnp.asarray([seed], dtype=jnp.int32)

    out = pl.pallas_call(
        _sampler_kernel,
        out_shape=jax.ShapeDtypeStruct((rows, block_n), dtype),
        grid=grid,
        in_specs=[
            pl.BlockSpec(memory_space=pltpu.MemorySpace.SMEM),   # seed scalar
            pl.BlockSpec((block_r, block_n), lambda i: (i, 0)),  # mu tile
            pl.BlockSpec((block_r, block_n), lambda i: (i, 0)),  # logvar tile
        ],
        out_specs=pl.BlockSpec((block_r, block_n), lambda i: (i, 0)),
        compiler_params=pltpu.CompilerParams(
            dimension_semantics=("parallel",),
            vmem_limit_bytes=32 * 1024 * 1024,
        ),
    )(seed_arr, mu2, lv2)

    return out.reshape(orig_shape)


if __name__ == "__main__":
    key = jax.random.PRNGKey(0)
    k1, k2 = jax.random.split(key)

    B, C, H, W = 2, 4, 16, 16
    mu = jax.random.normal(k1, (B, C, H, W), dtype=jnp.float32)
    logvar = 0.1 * jax.random.normal(k2, (B, C, H, W), dtype=jnp.float32)

    out = sampler((mu, logvar), seed=0)
    out = jax.block_until_ready(out)

    assert out.shape == (B, C, H, W)
    assert out.dtype == jnp.float32
    assert bool(jnp.all(jnp.isfinite(out)))
    # Sanity: implied eps = (out - mu) / std should look standard normal.
    eps_implied = (out - mu) / jnp.exp(0.5 * logvar)
    assert bool(jnp.abs(jnp.mean(eps_implied)) < 0.3)
    assert bool(jnp.abs(jnp.std(eps_implied) - 1.0) < 0.25)

    print("KERNEL_OK")
</pallas_src>

<mosaic_0001>
module attributes {stable_mosaic.version = 11 : i64} {
  func.func @_sampler_kernel(%arg0: i32, %arg1: memref<1xi32, #tpu.memory_space<smem>>, %arg2: memref<1x2048xf32, #tpu.memory_space<vmem>>, %arg3: memref<1x2048xf32, #tpu.memory_space<vmem>>, %arg4: memref<1x2048xf32, #tpu.memory_space<vmem>>) attributes {dimension_semantics = [#tpu.dimension_semantics<parallel>], iteration_bounds = array<i64: 1>, scalar_prefetch = 0 : i64, scratch_operands = 0 : i64, tpu.core_type = #tpu.core_type<tc>, window_params = [{transform_indices = @transform_0, window_bounds = array<i64: 1>}, {transform_indices = @transform_1, window_bounds = array<i64: 1, 2048>}, {transform_indices = @transform_2, window_bounds = array<i64: 1, 2048>}, {transform_indices = @transform_3, window_bounds = array<i64: 1, 2048>}]} {
    %c1_i32 = arith.constant 1 : i32
    %0 = arith.muli %arg0, %c1_i32 : i32
    %1 = tpu.iota {dimensions = array<i32: 0>} : vector<1x1024xi32>
    %2 = vector.broadcast %0 : i32 to vector<1x1024xi32>
    %3 = arith.addi %1, %2 : vector<1x1024xi32>
    %4 = tpu.iota {dimensions = array<i32: 1>} : vector<1x1024xi32>
    %c1024_i32 = arith.constant 1024 : i32
    %5 = vector.broadcast %c1024_i32 : i32 to vector<1x1024xi32>
    %6 = arith.muli %3, %5 : vector<1x1024xi32>
    %7 = arith.addi %6, %4 : vector<1x1024xi32>
    %c0 = arith.constant 0 : index
    %8 = memref.load %arg1[%c0] : memref<1xi32, #tpu.memory_space<smem>>
    %c608135816_i32 = arith.constant 608135816 : i32
    %9 = arith.addi %8, %c608135816_i32 : i32
    %c16_i32 = arith.constant 16 : i32
    %10 = arith.shrui %9, %c16_i32 : i32
    %11 = arith.xori %9, %10 : i32
    %c2146121005_i32 = arith.constant 2146121005 : i32
    %12 = arith.muli %11, %c2146121005_i32 : i32
    %c15_i32 = arith.constant 15 : i32
    %13 = arith.shrui %12, %c15_i32 : i32
    %14 = arith.xori %12, %13 : i32
    %c-2073254261_i32 = arith.constant -2073254261 : i32
    %15 = arith.muli %14, %c-2073254261_i32 : i32
    %c16_i32_0 = arith.constant 16 : i32
    %16 = arith.shrui %15, %c16_i32_0 : i32
    %17 = arith.xori %15, %16 : i32
    %c-2052912941_i32 = arith.constant -2052912941 : i32
    %18 = arith.addi %8, %c-2052912941_i32 : i32
    %c16_i32_1 = arith.constant 16 : i32
    %19 = arith.shrui %18, %c16_i32_1 : i32
    %20 = arith.xori %18, %19 : i32
    %c2146121005_i32_2 = arith.constant 2146121005 : i32
    %21 = arith.muli %20, %c2146121005_i32_2 : i32
    %c15_i32_3 = arith.constant 15 : i32
    %22 = arith.shrui %21, %c15_i32_3 : i32
    %23 = arith.xori %21, %22 : i32
    %c-2073254261_i32_4 = arith.constant -2073254261 : i32
    %24 = arith.muli %23, %c-2073254261_i32_4 : i32
    %c16_i32_5 = arith.constant 16 : i32
    %25 = arith.shrui %24, %c16_i32_5 : i32
    %26 = arith.xori %24, %25 : i32
    %c-1640531527_i32 = arith.constant -1640531527 : i32
    %27 = vector.broadcast %c-1640531527_i32 : i32 to vector<1x1024xi32>
    %28 = arith.muli %7, %27 : vector<1x1024xi32>
    %29 = vector.broadcast %17 : i32 to vector<1x1024xi32>
    %30 = arith.addi %28, %29 : vector<1x1024xi32>
    %c16_i32_6 = arith.constant 16 : i32
    %31 = vector.broadcast %c16_i32_6 : i32 to vector<1x1024xi32>
    %32 = arith.shrui %30, %31 : vector<1x1024xi32>
    %33 = arith.xori %30, %32 : vector<1x1024xi32>
    %c2146121005_i32_7 = arith.constant 2146121005 : i32
    %34 = vector.broadcast %c2146121005_i32_7 : i32 to vector<1x1024xi32>
    %35 = arith.muli %33, %34 : vector<1x1024xi32>
    %c15_i32_8 = arith.constant 15 : i32
    %36 = vector.broadcast %c15_i32_8 : i32 to vector<1x1024xi32>
    %37 = arith.shrui %35, %36 : vector<1x1024xi32>
    %38 = arith.xori %35, %37 : vector<1x1024xi32>
    %c-2073254261_i32_9 = arith.constant -2073254261 : i32
    %39 = vector.broadcast %c-2073254261_i32_9 : i32 to vector<1x1024xi32>
    %40 = arith.muli %38, %39 : vector<1x1024xi32>
    %c16_i32_10 = arith.constant 16 : i32
    %41 = vector.broadcast %c16_i32_10 : i32 to vector<1x1024xi32>
    %42 = arith.shrui %40, %41 : vector<1x1024xi32>
    %43 = arith.xori %40, %42 : vector<1x1024xi32>
    %c8_i32 = arith.constant 8 : i32
    %44 = vector.broadcast %c8_i32 : i32 to vector<1x1024xi32>
    %45 = arith.shrui %43, %44 : vector<1x1024xi32>
    %46 = arith.sitofp %45 : vector<1x1024xi32> to vector<1x1024xf32>
    %cst = arith.constant 5.96046448E-8 : f32
    %47 = vector.broadcast %cst : f32 to vector<1x1024xf32>
    %48 = arith.mulf %46, %47 : vector<1x1024xf32>
    %cst_11 = arith.constant 1.000000e+00 : f32
    %49 = vector.broadcast %cst_11 : f32 to vector<1x1024xf32>
    %50 = arith.subf %49, %48 : vector<1x1024xf32>
    %c-1640531527_i32_12 = arith.constant -1640531527 : i32
    %51 = vector.broadcast %c-1640531527_i32_12 : i32 to vector<1x1024xi32>
    %52 = arith.muli %7, %51 : vector<1x1024xi32>
    %53 = vector.broadcast %26 : i32 to vector<1x1024xi32>
    %54 = arith.addi %52, %53 : vector<1x1024xi32>
    %c16_i32_13 = arith.constant 16 : i32
    %55 = vector.broadcast %c16_i32_13 : i32 to vector<1x1024xi32>
    %56 = arith.shrui %54, %55 : vector<1x1024xi32>
    %57 = arith.xori %54, %56 : vector<1x1024xi32>
    %c2146121005_i32_14 = arith.constant 2146121005 : i32
    %58 = vector.broadcast %c2146121005_i32_14 : i32 to vector<1x1024xi32>
    %59 = arith.muli %57, %58 : vector<1x1024xi32>
    %c15_i32_15 = arith.constant 15 : i32
    %60 = vector.broadcast %c15_i32_15 : i32 to vector<1x1024xi32>
    %61 = arith.shrui %59, %60 : vector<1x1024xi32>
    %62 = arith.xori %59, %61 : vector<1x1024xi32>
    %c-2073254261_i32_16 = arith.constant -2073254261 : i32
    %63 = vector.broadcast %c-2073254261_i32_16 : i32 to vector<1x1024xi32>
    %64 = arith.muli %62, %63 : vector<1x1024xi32>
    %c16_i32_17 = arith.constant 16 : i32
    %65 = vector.broadcast %c16_i32_17 : i32 to vector<1x1024xi32>
    %66 = arith.shrui %64, %65 : vector<1x1024xi32>
    %67 = arith.xori %64, %66 : vector<1x1024xi32>
    %c8_i32_18 = arith.constant 8 : i32
    %68 = vector.broadcast %c8_i32_18 : i32 to vector<1x1024xi32>
    %69 = arith.shrui %67, %68 : vector<1x1024xi32>
    %70 = arith.sitofp %69 : vector<1x1024xi32> to vector<1x1024xf32>
    %cst_19 = arith.constant 5.96046448E-8 : f32
    %71 = vector.broadcast %cst_19 : f32 to vector<1x1024xf32>
    %72 = arith.mulf %70, %71 : vector<1x1024xf32>
    %cst_20 = arith.constant 1.000000e+00 : f32
    %73 = vector.broadcast %cst_20 : f32 to vector<1x1024xf32>
    %74 = arith.subf %73, %72 : vector<1x1024xf32>
    %75 = math.log %50 : vector<1x1024xf32>
    %cst_21 = arith.constant -2.000000e+00 : f32
    %76 = vector.broadcast %cst_21 : f32 to vector<1x1024xf32>
    %77 = arith.mulf %76, %75 : vector<1x1024xf32>
    %78 = math.sqrt %77 : vector<1x1024xf32>
    %cst_22 = arith.constant 6.28318548 : f32
    %79 = vector.broadcast %cst_22 : f32 to vector<1x1024xf32>
    %80 = arith.mulf %79, %74 : vector<1x1024xf32>
    %81 = math.cos %80 : vector<1x1024xf32>
    %82 = arith.mulf %78, %81 : vector<1x1024xf32>
    %83 = math.sin %80 : vector<1x1024xf32>
    %84 = arith.mulf %78, %83 : vector<1x1024xf32>
    %85 = tpu.concatenate %82, %84 in 1 : vector<1x1024xf32>, vector<1x1024xf32> -> vector<1x2048xf32>
    %c0_23 = arith.constant 0 : index
    %c0_24 = arith.constant 0 : index
    %86 = vector.load %arg2[%c0_23, %c0_24] : memref<1x2048xf32, #tpu.memory_space<vmem>>, vector<1x2048xf32>
    %c0_25 = arith.constant 0 : index
    %c0_26 = arith.constant 0 : index
    %87 = vector.load %arg3[%c0_25, %c0_26] : memref<1x2048xf32, #tpu.memory_space<vmem>>, vector<1x2048xf32>
    %cst_27 = arith.constant 5.000000e-01 : f32
    %88 = vector.broadcast %cst_27 : f32 to vector<1x2048xf32>
    %89 = arith.mulf %88, %87 : vector<1x2048xf32>
    %90 = math.exp %89 : vector<1x2048xf32>
    %91 = arith.mulf %85, %90 : vector<1x2048xf32>
    %92 = arith.addf %91, %86 : vector<1x2048xf32>
    %c0_28 = arith.constant 0 : index
    %c0_29 = arith.constant 0 : index
    %93 = vector.load %arg4[%c0_28, %c0_29] : memref<1x2048xf32, #tpu.memory_space<vmem>>, vector<1x2048xf32>
    tpu.vector_store %arg4[%c0_28, %c0_29], %92 {strides = array<i32>} : memref<1x2048xf32, #tpu.memory_space<vmem>>, vector<1x2048xf32>,
    return
  }
  func.func @transform_0(%arg0: i32) -> i32 {
    %c0_i32 = arith.constant 0 : i32
    %c0_i32_0 = arith.constant 0 : i32
    return %c0_i32 : i32
  }
  func.func @transform_1(%arg0: i32) -> (i32, i32) {
    %c0_i32 = arith.constant 0 : i32
    %c0_i32_0 = arith.constant 0 : i32
    return %arg0, %c0_i32 : i32, i32
  }
  func.func @transform_2(%arg0: i32) -> (i32, i32) {
    %c0_i32 = arith.constant 0 : i32
    %c0_i32_0 = arith.constant 0 : i32
    return %arg0, %c0_i32 : i32, i32
  }
  func.func @transform_3(%arg0: i32) -> (i32, i32) {
    %c0_i32 = arith.constant 0 : i32
    %c0_i32_0 = arith.constant 0 : i32
    return %arg0, %c0_i32 : i32, i32
  }
}

</mosaic_0001>

<bundles_post_ra>
// kernel: tpu_custom_call.1
= control target key start
LH: loop header
LB: loop body
LE: loop exit
PB: predicated region body
PF: predicated region fallthrough
CT: control target
= control target key end

     0   :  { %9 = vsyncpa [#allocation4], 0  ;;  %s4040_s0 = inlined_call_operand.<no memory space> [shape: s32[1], index: 0, kind: input, shape index: {}]   ;;  %s4041_s1 = inlined_call_operand.hbm [shape: f32[1,2048], index: 1, kind: input, shape index: {}]   ;;  %s4042_s2 = inlined_call_operand.hbm [shape: f32[1,2048], index: 2, kind: input, shape index: {}]   ;;  %s4043_s3 = inlined_call_operand.hbm [shape: f32[1,2048], index: 3, kind: output, shape index: {}]  }
   0x1   :  { %10 = vsyncpa [#allocation7], 0 }
   0x2   :  { %11 = vsyncpa [#allocation5], 0  ;;  %s2645_s12 = smov [#allocation3]   ;;  %s2646_s14 = smov [#allocation6]  }
   0x3   :  { %s20_s13 = sshll.u32 %s2645_s12, 4  ;;  %s30_s15 = sshll.u32 %s2646_s14, 4  ;;  %s21_s13 = int_to_ptr.vmem [resolvable:$true] %s20_s13  ;;  %s31_s15 = int_to_ptr.vmem [resolvable:$true] %s30_s15 }
   0x4   :  { %s2573_s18 = scalar_lea.hbm %s4041_s1, 256 }
   0x5   :  { %p2574_p0 = scmp.ne.s32.totalorder %s4041_s1, %s2573_s18  ;;  %p2577_p1 = scmp.lt.u32.totalorder %s2573_s18, %s4041_s1 }
   0x7   :  { %p2579_p2 = pnand %p2577_p1, %p2574_p0 }
   0x9   :  { %2582 = shalt.err (!%p2579_p2)
}
   0xa   :  { %s2583_s23 = scalar_lea.vmem %s21_s13, 256  ;;  %p2588_p4 = scmp.lt.s32.totalorder %s21_s13, %s21_s13 }
   0xb   :  { %p2584_p3 = scmp.ne.s32.totalorder %s21_s13, %s2583_s23  ;;  %p2589_p5 = scmp.lt.s32.totalorder %s2583_s23, %s2583_s23 }
   0xd   :  { %p2590_p6 = por %p2589_p5, %p2588_p4 }
   0xf   :  { %p2591_p7 = pnand %p2590_p6, %p2584_p3 }
  0x11   :  { %2594 = shalt.err (!%p2591_p7)
}
  0x12   :  { %23 = dma.hbm_to_vmem [thread:$0]  %s4041_s1, 256, %s21_s13, [#allocation4]  }
  0x13   :  { %s2595_s28 = scalar_lea.hbm %s4042_s2, 256 }
  0x14   :  { %p2596_p8 = scmp.ne.s32.totalorder %s4042_s2, %s2595_s28  ;;  %p2599_p9 = scmp.lt.u32.totalorder %s2595_s28, %s4042_s2 }
  0x16   :  { %p2601_p10 = pnand %p2599_p9, %p2596_p8 }
  0x18   :  { %2604 = shalt.err (!%p2601_p10)
}
  0x19   :  { %s2605_s6 = scalar_lea.vmem %s31_s15, 256  ;;  %p2610_p12 = scmp.lt.s32.totalorder %s31_s15, %s31_s15 }
  0x1a   :  { %p2606_p11 = scmp.ne.s32.totalorder %s31_s15, %s2605_s6  ;;  %p2611_p13 = scmp.lt.s32.totalorder %s2605_s6, %s2605_s6 }
  0x1c   :  { %p2612_p0 = por %p2611_p13, %p2610_p12 }
  0x1e   :  { %p2613_p1 = pnand %p2612_p0, %p2606_p11 }
  0x20   :  { %2616 = shalt.err (!%p2613_p1)
}
  0x21   :  { %33 = dma.hbm_to_vmem [thread:$0]  %s4042_s2, 256, %s31_s15, [#allocation7]  }
  0x22   :  { %2639 = dma.done.wait [#allocation4], 256  }
  0x23   :  { %2640 = vsyncadd [#allocation4], 4294967040 }
  0x24   :  { %2641 = dma.done.wait [#allocation7], 256  }
  0x25   :  { %2642 = vsyncadd [#allocation7], 4294967040  ;;  %v40_v0 = vlaneseq  ;;  %s63_s10 = sadd.s32 608135816, %s4040_s0  ;;  %s72_s17 = sadd.s32 2242054355, %s4040_s0 }
  0x26   :  { %s64_s11 = sshrl.u32 %s63_s10, 16  ;;  %s73_s20 = sshrl.u32 %s72_s17, 16 }
  0x27   :  { %v2702_v1 = vshrl.u32 %v40_v0, 7  ;;  %v45_v2 = vand.u32 127, %v40_v0  ;;  %s65_s12 = sxor.u32 %s64_s11, %s63_s10  ;;  %s74_s22 = sxor.u32 %s73_s20, %s72_s17 }
  0x28   :  { %s66_s13 = smul.u32 2146121005, %s65_s12  ;;  %s2654_s28 = smov [#allocation8]  }
  0x29   :  { %4076 = vst [vmem:[#allocation12_spill] sm:$0xff] %v2702_v1  ;;  %v46_v3 = vadd.s32 128, %v45_v2  ;;  %v53_v4 = vmul.u32 1024, %v2702_v1  ;;  %v47_v10 = vadd.s32 256, %v45_v2  ;;  %s75_s23 = smul.u32 2146121005, %s74_s22 }
  0x2a   :  { %s67_s14 = sshrl.u32 %s66_s13, 15  ;;  %v48_v13 = vadd.s32 384, %v45_v2  ;;  %v49_v14 = vadd.s32 512, %v45_v2  ;;  %v50_v15 = vadd.s32 640, %v45_v2  ;;  %v51_v16 = vadd.s32 768, %v45_v2  ;;  %s2389_s29 = sshll.u32 %s2654_s28, 4  ;;  %s2390_s29 = int_to_ptr.vmem [resolvable:$true] %s2389_s29 }
  0x2b   :  { %s68_s2 = sxor.u32 %s67_s14, %s66_s13  ;;  %v2708_v5 = vadd.s32 %v53_v4, %v45_v2  ;;  %v2710_v6 = vadd.s32 %v53_v4, %v46_v3  ;;  %v52_v17 = vadd.s32 896, %v45_v2  ;;  %v56_v18 = vadd.s32 %v53_v4, %v47_v10  ;;  %s76_s0 = sshrl.u32 %s75_s23, 15 }
  0x2c   :  { %s69_s18 = smul.u32 2221713035, %s68_s2  ;;  %v57_v21 = vadd.s32 %v53_v4, %v48_v13  ;;  %v58_v22 = vadd.s32 %v53_v4, %v49_v14  ;;  %v59_v23 = vadd.s32 %v53_v4, %v50_v15  ;;  %v60_v24 = vadd.s32 %v53_v4, %v51_v16  ;;  %s77_s24 = sxor.u32 %s76_s0, %s75_s23 }
  0x2d   :  { %v81_v8 = vmul.u32 2654435769, %v2708_v5  ;;  %v82_v9 = vmul.u32 2654435769, %v2710_v6  ;;  %v61_v25 = vadd.s32 %v53_v4, %v52_v17  ;;  %s78_s25 = smul.u32 2221713035, %s77_s24  ;;  %p2622_p3 = scmp.lt.s32.totalorder %s2390_s29, %s2390_s29 }
  0x2e   :  { %s70_s19 = sshrl.u32 %s69_s18, 16  ;;  %v83_v26 = vmul.u32 2654435769, %v56_v18  ;;  %v84_v29 = vmul.u32 2654435769, %v57_v21  ;;  %s2617_s30 = scalar_lea.vmem %s2390_s29, 256 }
  0x2f   :  { %s71_s21 = sxor.u32 %s70_s19, %s69_s18  ;;  %v85_v30 = vmul.u32 2654435769, %v58_v22  ;;  %v86_v31 = vmul.u32 2654435769, %v59_v23  ;;  %s79_s26 = sshrl.u32 %s78_s25, 16 }
  0x30   :  { %v89_v7 = vstv %s71_s21  ;;  %v87_v33 = vmul.u32 2654435769, %v60_v24  ;;  %v88_v34 = vmul.u32 2654435769, %v61_v25  ;;  %s80_s27 = sxor.u32 %s79_s26, %s78_s25  ;;  %p2618_p2 = scmp.ne.s32.totalorder %s2390_s29, %s2617_s30 }
  0x31   :  { %v90_v11 = vadd.s32 %v89_v7, %v81_v8  ;;  %v91_v12 = vadd.s32 %v89_v7, %v82_v9  ;;  %v92_v32 = vadd.s32 %v89_v7, %v83_v26  ;;  %v93_v35 = vadd.s32 %v89_v7, %v84_v29  ;;  %p2623_p4 = scmp.lt.s32.totalorder %s2617_s30, %s2617_s30 }
  0x32   :  { %v94_v36 = vadd.s32 %v89_v7, %v85_v30  ;;  %v95_v39 = vadd.s32 %v89_v7, %v86_v31  ;;  %v96_v40 = vadd.s32 %v89_v7, %v87_v33  ;;  %v97_v41 = vadd.s32 %v89_v7, %v88_v34 }
  0x33   :  { %v98_v19 = vshrl.u32 %v90_v11, 16  ;;  %v99_v20 = vshrl.u32 %v91_v12, 16  ;;  %v100_v42 = vshrl.u32 %v92_v32, 16  ;;  %v101_v43 = vshrl.u32 %v93_v35, 16  ;;  %p2624_p5 = por %p2623_p4, %p2622_p3 }
  0x34   :  { %v102_v44 = vshrl.u32 %v94_v36, 16  ;;  %v103_v47 = vshrl.u32 %v95_v39, 16  ;;  %v104_v48 = vshrl.u32 %v96_v40, 16  ;;  %v105_v49 = vshrl.u32 %v97_v41, 16 }
  0x35   :  { %v106_v27 = vxor.u32 %v98_v19, %v90_v11  ;;  %v107_v28 = vxor.u32 %v99_v20, %v91_v12  ;;  %v108_v50 = vxor.u32 %v100_v42, %v92_v32  ;;  %v2714_v51 = vxor.u32 %v101_v43, %v93_v35  ;;  %p2625_p6 = pnand %p2624_p5, %p2618_p2 }
  0x36   :  { %v2716_v52 = vxor.u32 %v102_v44, %v94_v36  ;;  %v194_v55 = vstv %s80_s27  ;;  %v2718_v56 = vxor.u32 %v103_v47, %v95_v39  ;;  %v2720_v57 = vxor.u32 %v104_v48, %v96_v40 }
  0x37   :  { %v114_v37 = vmul.u32 2146121005, %v106_v27  ;;  %v115_v38 = vmul.u32 2146121005, %v107_v28  ;;  %v2722_v58 = vxor.u32 %v105_v49, %v97_v41  ;;  %v195_v62 = vadd.s32 %v194_v55, %v81_v8 }
  0x38   :  { %v116_v59 = vmul.u32 2146121005, %v108_v50  ;;  %v117_v60 = vmul.u32 2146121005, %v2714_v51  ;;  %v196_v63 = vadd.s32 %v194_v55, %v82_v9  ;;  %v197_v3 = vadd.s32 %v194_v55, %v83_v26 }
  0x39   :  { %v122_v45 = vshrl.u32 %v114_v37, 15  ;;  %v123_v46 = vshrl.u32 %v115_v38, 15  ;;  %v118_v61 = vmul.u32 2146121005, %v2716_v52  ;;  %v198_v4 = vadd.s32 %v194_v55, %v84_v29 }
  0x3a   :  { %v199_v5 = vadd.s32 %v194_v55, %v85_v30  ;;  %v200_v6 = vadd.s32 %v194_v55, %v86_v31  ;;  %v201_v7 = vadd.s32 %v194_v55, %v87_v33  ;;  %v202_v10 = vadd.s32 %v194_v55, %v88_v34 }
  0x3b   :  { %v130_v53 = vxor.u32 %v122_v45, %v114_v37  ;;  %v131_v54 = vxor.u32 %v123_v46, %v115_v38  ;;  %v203_v11 = vshrl.u32 %v195_v62, 16  ;;  %v204_v12 = vshrl.u32 %v196_v63, 16 }
  0x3c   :  { %v205_v13 = vshrl.u32 %v197_v3, 16  ;;  %v206_v14 = vshrl.u32 %v198_v4, 16  ;;  %v207_v15 = vshrl.u32 %v199_v5, 16  ;;  %v208_v16 = vshrl.u32 %v200_v6, 16 }
  0x3d   :  { %v138_v0 = vmul.u32 2221713035, %v130_v53  ;;  %v139_v2 = vmul.u32 2221713035, %v131_v54  ;;  %v209_v17 = vshrl.u32 %v201_v7, 16  ;;  %v210_v18 = vshrl.u32 %v202_v10, 16 }
  0x3e   :  { %v119_v19 = vmul.u32 2146121005, %v2718_v56  ;;  %v120_v8 = vmul.u32 2146121005, %v2720_v57  ;;  %v211_v9 = vxor.u32 %v203_v11, %v195_v62  ;;  %v212_v20 = vxor.u32 %v204_v12, %v196_v63 }
  0x3f   :  { %v121_v21 = vmul.u32 2146121005, %v2722_v58  ;;  %v124_v22 = vshrl.u32 %v116_v59, 15  ;;  %v213_v23 = vxor.u32 %v205_v13, %v197_v3  ;;  %v214_v24 = vxor.u32 %v206_v14, %v198_v4 }
  0x40   :  { %v215_v25 = vxor.u32 %v207_v15, %v199_v5  ;;  %v216_v26 = vxor.u32 %v208_v16, %v200_v6  ;;  %v219_v27 = vmul.u32 2146121005, %v211_v9  ;;  %v220_v28 = vmul.u32 2146121005, %v212_v20 }
  0x41   :  { %v146_v29 = vshrl.u32 %v138_v0, 16  ;;  %v147_v30 = vshrl.u32 %v139_v2, 16  ;;  %v217_v31 = vxor.u32 %v209_v17, %v201_v7  ;;  %v218_v32 = vxor.u32 %v210_v18, %v202_v10 }
  0x42   :  { %v125_v33 = vshrl.u32 %v117_v60, 15  ;;  %v126_v34 = vshrl.u32 %v118_v61, 15  ;;  %v227_v35 = vshrl.u32 %v219_v27, 15  ;;  %v228_v36 = vshrl.u32 %v220_v28, 15 }
  0x43   :  { %v127_v37 = vshrl.u32 %v119_v19, 15  ;;  %v2729_v38 = vxor.u32 %v124_v22, %v116_v59  ;;  %v221_v39 = vmul.u32 2146121005, %v213_v23  ;;  %v222_v40 = vmul.u32 2146121005, %v214_v24 }
  0x44   :  { %v223_v41 = vmul.u32 2146121005, %v215_v25  ;;  %v224_v42 = vmul.u32 2146121005, %v216_v26  ;;  %v235_v43 = vxor.u32 %v227_v35, %v219_v27  ;;  %v236_v44 = vxor.u32 %v228_v36, %v220_v28 }
  0x45   :  { %v154_v45 = vxor.u32 %v146_v29, %v138_v0  ;;  %v155_v46 = vxor.u32 %v147_v30, %v139_v2  ;;  %v225_v47 = vmul.u32 2146121005, %v217_v31  ;;  %v226_v48 = vmul.u32 2146121005, %v218_v32 }
  0x46   :  { %v128_v49 = vshrl.u32 %v120_v8, 15  ;;  %v129_v50 = vshrl.u32 %v121_v21, 15  ;;  %v243_v51 = vmul.u32 2221713035, %v235_v43  ;;  %v244_v52 = vmul.u32 2221713035, %v236_v44 }
  0x47   :  { %v133_v53 = vxor.u32 %v125_v33, %v117_v60  ;;  %v134_v54 = vxor.u32 %v126_v34, %v118_v61  ;;  %v135_v55 = vxor.u32 %v127_v37, %v119_v19  ;;  %v140_v56 = vmul.u32 2221713035, %v2729_v38 }
  0x48   :  { %v229_v57 = vshrl.u32 %v221_v39, 15  ;;  %v230_v58 = vshrl.u32 %v222_v40, 15  ;;  %v251_v59 = vshrl.u32 %v243_v51, 16  ;;  %v252_v62 = vshrl.u32 %v244_v52, 16 }
  0x49   :  { %v162_v63 = vshrl.u32 %v154_v45, 8  ;;  %v163_v3 = vshrl.u32 %v155_v46, 8  ;;  %v231_v4 = vshrl.u32 %v223_v41, 15  ;;  %v232_v0 = vshrl.u32 %v224_v42, 15 }
  0x4a   :  { %v233_v2 = vshrl.u32 %v225_v47, 15  ;;  %v234_v5 = vshrl.u32 %v226_v48, 15  ;;  %v259_v6 = vxor.u32 %v251_v59, %v243_v51  ;;  %v260_v7 = vxor.u32 %v252_v62, %v244_v52 }
  0x4b   :  { %v136_v10 = vxor.u32 %v128_v49, %v120_v8  ;;  %v137_v11 = vxor.u32 %v129_v50, %v121_v21  ;;  %v141_v12 = vmul.u32 2221713035, %v133_v53  ;;  %v142_v60 = vmul.u32 2221713035, %v134_v54 }
  0x4c   :  { %v143_v61 = vmul.u32 2221713035, %v135_v55  ;;  %v237_v13 = vxor.u32 %v229_v57, %v221_v39  ;;  %v238_v14 = vxor.u32 %v230_v58, %v222_v40  ;;  %v267_v15 = vshrl.u32 %v259_v6, 8 }
  0x4d   :  { %v170_v16 = vcvt.s32.f32 %v162_v63  ;;  %v239_v17 = vxor.u32 %v231_v4, %v223_v41  ;;  %v240_v18 = vxor.u32 %v232_v0, %v224_v42  ;;  %v268_v19 = vshrl.u32 %v260_v7, 8 }
  0x4e   :  { %v171_v9 = vcvt.s32.f32 %v163_v3  ;;  %v241_v20 = vxor.u32 %v233_v2, %v225_v47  ;;  %v242_v22 = vxor.u32 %v234_v5, %v226_v48  ;;  %v275_v23 = vcvt.s32.f32 %v267_v15 }
  0x4f   :  { %v144_v24 = vmul.u32 2221713035, %v136_v10  ;;  %v145_v25 = vmul.u32 2221713035, %v137_v11  ;;  %v148_v26 = vshrl.u32 %v140_v56, 16  ;;  %v178_v28 = vmul.f32 5.9604645e-08, %v170_v16 }
  0x50   :  { %v245_v27 = vmul.u32 2221713035, %v237_v13  ;;  %v246_v8 = vmul.u32 2221713035, %v238_v14  ;;  %v283_v21 = vmul.f32 5.9604645e-08, %v275_v23  ;;  %v276_v31 = vcvt.s32.f32 %v268_v19 }
  0x51   :  { %v247_v29 = vmul.u32 2221713035, %v239_v17  ;;  %v248_v30 = vmul.u32 2221713035, %v240_v18  ;;  %v149_v32 = vshrl.u32 %v141_v12, 16  ;;  %v179_v33 = vmul.f32 5.9604645e-08, %v171_v9 }
  0x52   :  { %v249_v34 = vmul.u32 2221713035, %v241_v20  ;;  %v250_v35 = vmul.u32 2221713035, %v242_v22  ;;  %v150_v36 = vshrl.u32 %v142_v60, 16  ;;  %v151_v37 = vshrl.u32 %v143_v61, 16 }
  0x53   :  { %v156_v38 = vxor.u32 %v148_v26, %v140_v56  ;;  %v291_v39 = vsub.f32 1.0, %v283_v21  ;;  %v152_v40 = vshrl.u32 %v144_v24, 16  ;;  %v153_v41 = vshrl.u32 %v145_v25, 16 }
  0x54   :  { %v253_v42 = vshrl.u32 %v245_v27, 16  ;;  %v254_v43 = vshrl.u32 %v246_v8, 16  ;;  %v186_v44 = vsub.f32 1.0, %v178_v28  ;;  %v255_v45 = vshrl.u32 %v247_v29, 16 }
  0x55   :  { %v256_v46 = vshrl.u32 %v248_v30, 16  ;;  %v284_v47 = vmul.f32 5.9604645e-08, %v276_v31  ;;  %v157_v48 = vxor.u32 %v149_v32, %v141_v12  ;;  %v187_v49 = vsub.f32 1.0, %v179_v33 }
  0x56   :  { %v257_v50 = vshrl.u32 %v249_v34, 16  ;;  %v258_v51 = vshrl.u32 %v250_v35, 16  ;;  %v158_v52 = vxor.u32 %v150_v36, %v142_v60  ;;  %v159_v53 = vxor.u32 %v151_v37, %v143_v61 }
  0x57   :  { %v164_v54 = vshrl.u32 %v156_v38, 8  ;;  %v2732_v55 = vmul.f32 6.2831855, %v291_v39  ;;  %v160_v57 = vxor.u32 %v152_v40, %v144_v24  ;;  %v161_v56 = vxor.u32 %v153_v41, %v145_v25 }
  0x58   :  { %v261_v58 = vxor.u32 %v253_v42, %v245_v27  ;;  %v262_v59 = vxor.u32 %v254_v43, %v246_v8  ;;  %v263_v62 = vxor.u32 %v255_v45, %v247_v29  ;;  %v264_v63 = vxor.u32 %v256_v46, %v248_v30 }
  0x59   :  { %4077 = vst [vmem:[#allocation13_spill] sm:$0xff] %v2732_v55  ;;  %v292_v3 = vsub.f32 1.0, %v284_v47  ;;  %2505 = vlog2.f32 %v186_v44  ;;  %v165_v4 = vshrl.u32 %v157_v48, 8  ;;  %v265_v0 = vxor.u32 %v257_v50, %v249_v34 }
  0x5a   :  { %v266_v2 = vxor.u32 %v258_v51, %v250_v35  ;;  %2507 = vlog2.f32 %v187_v49  ;;  %v166_v5 = vshrl.u32 %v158_v52, 8  ;;  %v172_v6 = vcvt.s32.f32 %v164_v54 }
  0x5b   :  { %v390_v7 = vand.u32 2139095040, %v2732_v55  ;;  %v167_v10 = vshrl.u32 %v159_v53, 8  ;;  %v168_v11 = vshrl.u32 %v160_v57, 8  ;;  %v269_v12 = vshrl.u32 %v261_v58, 8 }
  0x5c   :  { %v270_v60 = vshrl.u32 %v262_v59, 8  ;;  %v169_v61 = vshrl.u32 %v161_v56, 8  ;;  %v271_v13 = vshrl.u32 %v263_v62, 8  ;;  %v272_v14 = vshrl.u32 %v264_v63, 8 }
  0x5d   :  { %v2735_v15 = vmul.f32 6.2831855, %v292_v3  ;;  %v173_v16 = vcvt.s32.f32 %v165_v4  ;;  %v273_v17 = vshrl.u32 %v265_v0, 8  ;;  %v274_v18 = vshrl.u32 %v266_v2, 8 }
  0x5e   :  { %v391_v19 = vshrl.u32 %v390_v7, 23  ;;  %v174_v9 = vcvt.s32.f32 %v166_v5  ;;  %v180_v20 = vmul.f32 5.9604645e-08, %v172_v6  ;;  %v175_v22 = vcvt.s32.f32 %v167_v10 }
  0x5f   :  { %v176_v23 = vcvt.s32.f32 %v168_v11  ;;  %v277_v24 = vcvt.s32.f32 %v269_v12  ;;  %v278_v25 = vcvt.s32.f32 %v270_v60  ;;  %v177_v26 = vcvt.s32.f32 %v169_v61 }
  0x60   :  { %v279_v27 = vcvt.s32.f32 %v271_v13  ;;  %v280_v8 = vcvt.s32.f32 %v272_v14  ;;  %v493_v21 = vand.u32 2139095040, %v2735_v15  ;;  %v181_v28 = vmul.f32 5.9604645e-08, %v173_v16 }
  0x61   :  { %v281_v29 = vcvt.s32.f32 %v273_v17  ;;  %v282_v30 = vcvt.s32.f32 %v274_v18  ;;  %v2399_v31 = vadd.s32 4294967169, %v391_v19  ;;  %v182_v33 = vmul.f32 5.9604645e-08, %v174_v9 }
  0x62   :  { %v188_v34 = vsub.f32 1.0, %v180_v20  ;;  %v183_v36 = vmul.f32 5.9604645e-08, %v175_v22  ;;  %v184_v37 = vmul.f32 5.9604645e-08, %v176_v23  ;;  %v285_v38 = vmul.f32 5.9604645e-08, %v277_v24 }
  0x63   :  { %v2506_v32 = vpop.eup %2505  ;;  %v286_v39 = vmul.f32 5.9604645e-08, %v278_v25  ;;  %v185_v40 = vmul.f32 5.9604645e-08, %v177_v26  ;;  %v287_v41 = vmul.f32 5.9604645e-08, %v279_v27  ;;  %v288_v42 = vmul.f32 5.9604645e-08, %v280_v8 }
  0x64   :  { %v2508_v35 = vpop.eup %2507  ;;  %v494_v43 = vshrl.u32 %v493_v21, 23  ;;  %v189_v44 = vsub.f32 1.0, %v181_v28  ;;  %v289_v45 = vmul.f32 5.9604645e-08, %v281_v29  ;;  %v290_v46 = vmul.f32 5.9604645e-08, %v282_v30 }
  0x65   :  { %v397_v47 = vadd.s32 1, %v2399_v31  ;;  %v190_v48 = vsub.f32 1.0, %v182_v33  ;;  %v300_v49 = vmul.f32 0.6931472, %v2506_v32  ;;  %v302_v50 = vmul.f32 0.6931472, %v2508_v35 }
  0x66   :  { %2509 = vlog2.f32 %v188_v34  ;;  %v191_v51 = vsub.f32 1.0, %v183_v36  ;;  %v192_v52 = vsub.f32 1.0, %v184_v37  ;;  %v293_v53 = vsub.f32 1.0, %v285_v38 }
  0x67   :  { %v294_v54 = vsub.f32 1.0, %v286_v39  ;;  %v193_v57 = vsub.f32 1.0, %v185_v40  ;;  %v295_v56 = vsub.f32 1.0, %v287_v41  ;;  %v296_v58 = vsub.f32 1.0, %v288_v42 }
  0x68   :  { %v2403_v59 = vadd.s32 4294967169, %v494_v43  ;;  %v297_v62 = vsub.f32 1.0, %v289_v45  ;;  %v298_v63 = vsub.f32 1.0, %v290_v46  ;;  %2511 = vlog2.f32 %v189_v44 }
  0x69   :  { %vm398_vm0 = vcmp.gt.s32.totalorder %v397_v47, 0  ;;  %2513 = vlog2.f32 %v190_v48  ;;  %v2738_v3 = vmul.f32 -2.0, %v300_v49  ;;  %v2740_v4 = vmul.f32 -2.0, %v302_v50 }
  0x6a   :  { %v387_v0 = vand.u32 2147483647, %v2732_v55  ;;  %v2743_v2 = vmul.f32 6.2831855, %v293_v53  ;;  %v2745_v5 = vmul.f32 6.2831855, %v294_v54  ;;  %2515 = vlog2.f32 %v191_v51 }
  0x6b   :  { %v490_v6 = vand.u32 2147483647, %v2735_v15  ;;  %v2748_v7 = vmul.f32 6.2831855, %v295_v56  ;;  %v399_v10 = vsel %vm398_vm0, %v397_v47, 0  ;;  %v500_v11 = vadd.s32 1, %v2403_v59 }
  0x6c   :  { %2517 = vlog2.f32 %v192_v52  ;;  %v328_v12 = vand.u32 2147483648, %v2738_v3  ;;  %v335_v60 = vand.u32 2147483648, %v2740_v4  ;;  %v401_v61 = vand.u32 31, %v399_v10 }
  0x6d   :  { %2519 = vlog2.f32 %v193_v57  ;;  %v2752_v13 = vmul.f32 6.2831855, %v296_v58  ;;  %v2754_v14 = vmul.f32 6.2831855, %v297_v62  ;;  %v394_v16 = vand.u32 8388607, %v387_v0 }
  0x6e   :  { %2521 = vrsqrt.f32 %v2738_v3  ;;  %v2759_v17 = vmul.f32 6.2831855, %v298_v63  ;;  %v402_v18 = vsub.s32 32, %v401_v61  ;;  %v497_v19 = vand.u32 8388607, %v490_v6 }
  0x6f   :  { %v400_v20 = vshrl.u32 %v399_v10, 5  ;;  %v4063_v22 = vmov 683565275   ;;  %v4058_v24 = vmov 2475754826   ;;  %vm501_vm1 = vcmp.gt.s32.totalorder %v500_v11, 0 }
  0x70   :  { %v2510_v9 = vpop.eup %2509  ;;  %v404_v23 = vshll.u32 %v4063_v22, %v401_v61  ;;  %v407_v25 = vshll.u32 %v4058_v24, %v401_v61  ;;  %v405_v26 = vshrl.u32 %v4058_v24, %v402_v18  ;;  %v4054_v27 = vmov 2131351028  }
  0x71   :  { %v408_v8 = vshrl.u32 %v4054_v27, %v402_v18  ;;  %v410_v21 = vshll.u32 %v4054_v27, %v401_v61  ;;  %v4046_v28 = vmov 2102212464   ;;  %v395_v30 = vor.u32 8388608, %v394_v16 }
  0x72   :  { %v413_v29 = vshll.u32 %v4046_v28, %v401_v61  ;;  %v411_v31 = vshrl.u32 %v4046_v28, %v402_v18  ;;  %v4056_v32 = vmov 920167782   ;;  %v2512_v35 = vpop.eup %2511  ;;  %v2772_v36 = vmul.f32 0.6931472, %v2510_v9 }
  0x73   :  { %v414_v33 = vshrl.u32 %v4056_v32, %v402_v18  ;;  %v416_v34 = vshll.u32 %v4056_v32, %v401_v61  ;;  %2523 = vrsqrt.f32 %v2740_v4  ;;  %v403_v37 = vshrl.u32 %v4063_v22, %v402_v18  ;;  %v2514_v39 = vpop.eup %2513 }
  0x74   :  { %v502_v38 = vsel %vm501_vm1, %v500_v11, 0  ;;  %v406_v40 = vor.u32 %v405_v26, %v404_v23  ;;  %v409_v41 = vor.u32 %v408_v8, %v407_v25  ;;  %v4048_v42 = vmov 1326507024   ;;  %v2779_v48 = vpop.eup %2515 }
  0x75   :  { %v417_v43 = vshrl.u32 %v4048_v42, %v402_v18  ;;  %v498_v44 = vor.u32 8388608, %v497_v19  ;;  %v412_v45 = vor.u32 %v411_v31, %v410_v21  ;;  %v415_v46 = vor.u32 %v414_v33, %v413_v29 }
  0x76   :  { %vm419_vm2 = vcmp.lt.s32.totalorder %v400_v20, 1  ;;  %v596_v47 = vand.u32 2139095040, %v2743_v2  ;;  %v2781_v49 = vmul.f32 0.6931472, %v2512_v35  ;;  %v435_v51 = vshll.u32 %v395_v30, 8  ;;  %v2783_v53 = vpop.eup %2517 }
  0x77   :  { %v418_v50 = vor.u32 %v417_v43, %v416_v34  ;;  %v504_v52 = vand.u32 31, %v502_v38  ;;  %v2785_v54 = vmul.f32 0.6931472, %v2514_v39  ;;  %vm421_vm3 = vcmp.lt.s32.totalorder %v400_v20, 3  ;;  %v2788_v56 = vpop.eup %2519 }
  0x78   :  { %vm422_vm4 = vcmp.lt.s32.totalorder %v400_v20, 4  ;;  %v423_v57 = vsel %vm419_vm2, %v403_v37, %v406_v40  ;;  %vm420_vm5 = vcmp.lt.s32.totalorder %v400_v20, 2  ;;  %v427_v59 = vsel %vm419_vm2, %v406_v40, %v409_v41  ;;  %v2793_v63 = vpop.eup %2521 }
  0x79   :  { %v424_v58 = vsel %vm422_vm4, %v412_v45, 2102212464  ;;  %v2791_v62 = vshll.u32 %v498_v44, 8  ;;  %v428_v11 = vsel %vm422_vm4, %v415_v46, 920167782  ;;  %v431_v61 = vsel %vm419_vm2, %v409_v41, %v412_v45 }
  0x7a   :  { %v425_v10 = vsel %vm421_vm3, %v409_v41, %v424_v58  ;;  %v597_v16 = vshrl.u32 %v596_v47, 23  ;;  %v429_v19 = vsel %vm421_vm3, %v412_v45, %v428_v11  ;;  %v432_v9 = vsel %vm422_vm4, %v418_v50, 1326507024 }
  0x7b   :  { %v426_v18 = vsel %vm420_vm5, %v423_v57, %v425_v10  ;;  %v505_v23 = vsub.s32 32, %v504_v52  ;;  %v430_v25 = vsel %vm420_vm5, %v427_v59, %v429_v19  ;;  %v433_v26 = vsel %vm421_vm3, %v415_v46, %v432_v9 }
  0x7c   :  { %v503_v8 = vshrl.u32 %v502_v38, 5  ;;  %v507_v21 = vshll.u32 %v4063_v22, %v504_v52  ;;  %v434_v29 = vsel %vm420_vm5, %v431_v61, %v433_v26  ;;  %v442_v33 = vmul.u32 %v435_v51, %v426_v18 }
  0x7d   :  { %v2803_v30 = vmul.u32.u64.low %v435_v51, %v430_v25  ;;  %v2804_v31 = vmul.u32.u64.high %v435_v51, %v430_v25, %v2803_v30  ;;  %v2807_v34 = vpop.eup %2523  ;;  %v2809_v35 = vmul.u32.u64.low %v435_v51, %v434_v29  ;;  %v2810_v37 = vmul.u32.u64.high %v435_v51, %v434_v29, %v2809_v35 }
  0x7e   :  { %v508_v39 = vshrl.u32 %v4058_v24, %v505_v23  ;;  %v510_v40 = vshll.u32 %v4058_v24, %v504_v52  ;;  %v511_v38 = vshrl.u32 %v4054_v27, %v505_v23  ;;  %v513_v41 = vshll.u32 %v4054_v27, %v504_v52 }
  0x7f   :  { %v514_v20 = vshrl.u32 %v4046_v28, %v505_v23  ;;  %v516_v43 = vshll.u32 %v4046_v28, %v504_v52  ;;  %v517_v45 = vshrl.u32 %v4056_v32, %v505_v23  ;;  %v519_v46 = vshll.u32 %v4056_v32, %v504_v52 }
  0x80   :  { %v509_v44 = vor.u32 %v508_v39, %v507_v21  ;;  %v520_v47 = vshrl.u32 %v4048_v42, %v505_v23  ;;  %v445_v50 = vadd.s32 1, %v2804_v31  ;;  %v512_v51 = vor.u32 %v511_v38, %v510_v40 }
  0x81   :  { %v515_v57 = vor.u32 %v514_v20, %v513_v41  ;;  %vm522_vm6 = vcmp.lt.s32.totalorder %v503_v8, 1  ;;  %vm444_vm7 = vc.u32 %v2810_v37, %v2803_v30  ;;  %v506_v58 = vshrl.u32 %v4063_v22, %v505_v23 }
  0x82   :  { %v518_v59 = vor.u32 %v517_v45, %v516_v43  ;;  %v521_v10 = vor.u32 %v520_v47, %v519_v46  ;;  %v446_v11 = vsel %vm444_vm7, %v445_v50, %v2804_v31  ;;  %vm524_vm8 = vcmp.lt.s32.totalorder %v503_v8, 3 }
  0x83   :  { %vm525_vm9 = vcmp.lt.s32.totalorder %v503_v8, 4  ;;  %v2407_v61 = vadd.s32 4294967169, %v597_v16  ;;  %v447_v52 = vadd.s32 %v446_v11, %v442_v33  ;;  %vm523_vm10 = vcmp.lt.s32.totalorder %v503_v8, 2 }
  0x84   :  { %v527_v18 = vsel %vm525_vm9, %v515_v57, 2102212464  ;;  %v530_v19 = vsel %vm522_vm6, %v509_v44, %v512_v51  ;;  %v2828_v9 = vmul.f32 -2.0, %v2772_v36  ;;  %v531_v25 = vsel %vm525_vm9, %v518_v59, 920167782 }
  0x85   :  { %v534_v26 = vsel %vm522_vm6, %v512_v51, %v515_v57  ;;  %v535_v21 = vsel %vm525_vm9, %v521_v10, 1326507024  ;;  %v448_v23 = vadd.s32 536870912, %v447_v52  ;;  %v526_v29 = vsel %vm522_vm6, %v506_v58, %v509_v44 }
  0x86   :  { %v532_v35 = vsel %vm524_vm8, %v515_v57, %v531_v25  ;;  %v536_v31 = vsel %vm524_vm8, %v518_v59, %v535_v21  ;;  %v528_v39 = vsel %vm524_vm8, %v512_v51, %v527_v18  ;;  %v603_v40 = vadd.s32 1, %v2407_v61 }
  0x87   :  { %v533_v16 = vsel %vm523_vm10, %v530_v19, %v532_v35  ;;  %v537_v33 = vsel %vm523_vm10, %v534_v26, %v536_v31  ;;  %v310_v38 = vmul.f32 0.6931472, %v2779_v48  ;;  %v2835_v41 = vshrl.u32 %v448_v23, 30 }
  0x88   :  { %v2838_v36 = vmul.u32.u64.low %v2791_v62, %v537_v33  ;;  %v2839_v20 = vmul.u32.u64.high %v2791_v62, %v537_v33, %v2838_v36  ;;  %v2842_v43 = vmul.f32 -2.0, %v2781_v49  ;;  %vm325_vm11 = vcmp.eq.f32.partialorder %v2738_v3, inf }
  0x89   :  { %v2846_v44 = vmul.u32.u64.low %v2791_v62, %v533_v16  ;;  %v2847_v45 = vmul.u32.u64.high %v2791_v62, %v533_v16, %v2846_v44  ;;  %vm604_vm12 = vcmp.gt.s32.totalorder %v603_v40, 0  ;;  %v312_v46 = vmul.f32 0.6931472, %v2783_v53 }
  0x8a   :  { %v450_v48 = vshll.u32 %v2835_v41, 30  ;;  %v529_v47 = vsel %vm523_vm10, %v526_v29, %v528_v39  ;;  %v605_v50 = vsel %vm604_vm12, %v603_v40, 0  ;;  %v314_v51 = vmul.f32 0.6931472, %v2788_v56 }
  0x8b   :  { %v2855_v49 = vmul.f32 -2.0, %v2785_v54  ;;  %v4044_v57 = vand.u32 2147483647, %v2743_v2  ;;  %v607_v58 = vand.u32 31, %v605_v50  ;;  %v2858_v59 = vmul.f32 -2.0, %v310_v38 }
  0x8c   :  { %2525 = vrsqrt.f32 %v2828_v9  ;;  %v2861_v10 = vsub.s32 %v447_v52, %v450_v48  ;;  %vm547_vm13 = vc.u32 %v2839_v20, %v2846_v44  ;;  %vm327_vm14 = vcmp.eq.f32.partialorder %v2738_v3, 0.0 }
  0x8d   :  { %vm332_vm15 = vcmp.eq.f32.partialorder %v2740_v4, inf  ;;  %v342_v53 = vand.u32 2147483648, %v2828_v9  ;;  %v545_v54 = vmul.u32 %v2791_v62, %v529_v47  ;;  %v548_v56 = vadd.s32 1, %v2847_v45 }
  0x8e   :  { %v608_v8 = vsub.s32 32, %v607_v58  ;;  %v2870_v11 = vmul.f32 -2.0, %v312_v46  ;;  %v324_v61 = vmul.f32 %v2793_v63, %v2738_v3  ;;  %2527 = vrsqrt.f32 %v2842_v43 }
  0x8f   :  { %v453_v52 = vsub.s32 0, %v2861_v10  ;;  %v2876_v18 = vmul.f32 -2.0, %v314_v51  ;;  %v331_v19 = vmul.f32 %v2807_v34, %v2740_v4  ;;  %v549_v25 = vsel %vm547_vm13, %v548_v56, %v2847_v45 }
  0x90   :  { %v600_v62 = vand.u32 8388607, %v4044_v57  ;;  %v2884_v21 = vshrl.u32 %v605_v50, 5  ;;  %v610_v63 = vshll.u32 %v4063_v22, %v607_v58  ;;  %v613_v23 = vshll.u32 %v4058_v24, %v607_v58 }
  0x91   :  { %v2400_v26 = vmin.u32 %v453_v52, %v2861_v10  ;;  %vm334_vm0 = vcmp.eq.f32.partialorder %v2740_v4, 0.0  ;;  %v550_v29 = vadd.s32 %v549_v25, %v545_v54  ;;  %v611_v35 = vshrl.u32 %v4058_v24, %v608_v8 }
  0x92   :  { %v614_v34 = vshrl.u32 %v4054_v27, %v608_v8  ;;  %v616_v31 = vshll.u32 %v4054_v27, %v607_v58  ;;  %v617_v16 = vshrl.u32 %v4046_v28, %v608_v8  ;;  %v619_v33 = vshll.u32 %v4046_v28, %v607_v58 }
  0x93   :  { %v455_v39 = vclz %v2400_v26  ;;  %v620_v40 = vshrl.u32 %v4056_v32, %v608_v8  ;;  %v349_v38 = vand.u32 2147483648, %v2842_v43  ;;  %v551_v36 = vadd.s32 536870912, %v550_v29 }
  0x94   :  { %v622_v45 = vshll.u32 %v4056_v32, %v607_v58  ;;  %v623_v46 = vshrl.u32 %v4048_v42, %v608_v8  ;;  %v326_v48 = vsel %vm325_vm11, %v2738_v3, %v324_v61  ;;  %2529 = vrsqrt.f32 %v2855_v49 }
  0x95   :  { %v2401_v47 = vadd.s32 4294967294, %v455_v39  ;;  %v621_v50 = vor.u32 %v620_v40, %v619_v33  ;;  %2531 = vrsqrt.f32 %v2858_v59  ;;  %v2903_v51 = vshrl.u32 %v551_v36, 30 }
  0x96   :  { %v601_v54 = vor.u32 8388608, %v600_v62  ;;  %vm628_vm1 = vcmp.lt.s32.totalorder %v2884_v21, 4  ;;  %v2526_v56 = vpop.eup %2525  ;;  %v612_v52 = vor.u32 %v611_v35, %v610_v63  ;;  %v615_v58 = vor.u32 %v614_v34, %v613_v23 }
  0x97   :  { %v618_v25 = vor.u32 %v617_v16, %v616_v31  ;;  %vm625_vm2 = vcmp.lt.s32.totalorder %v2884_v21, 1  ;;  %vm339_vm3 = vcmp.eq.f32.partialorder %v2828_v9, inf  ;;  %v553_v61 = vshll.u32 %v2903_v51, 30 }
  0x98   :  { %v624_v26 = vor.u32 %v623_v46, %v622_v45  ;;  %vm627_vm4 = vcmp.lt.s32.totalorder %v2884_v21, 3  ;;  %v634_v39 = vsel %vm628_vm1, %v621_v50, 920167782  ;;  %v2528_v33 = vpop.eup %2527  ;;  %v2916_v62 = vsel %vm327_vm14, %v328_v12, %v326_v48 }
  0x99   :  { %v333_v63 = vsel %vm332_vm15, %v2740_v4, %v331_v19  ;;  %vm2402_vm5 = vcmp.lt.s32.totalorder %v2401_v47, 0  ;;  %v699_v23 = vand.u32 2139095040, %v2745_v5  ;;  %v356_v35 = vand.u32 2147483648, %v2855_v49 }
  0x9a   :  { %v2923_v34 = vsub.s32 %v550_v29, %v553_v61  ;;  %v609_v31 = vshrl.u32 %v4063_v22, %v608_v8  ;;  %v2926_v16 = vshll.u32 %v601_v54, 8  ;;  %vm626_vm6 = vcmp.lt.s32.totalorder %v2884_v21, 2 }
  0x9b   :  { %v630_v3 = vsel %vm628_vm1, %v618_v25, 2102212464  ;;  %v633_v12 = vsel %vm625_vm2, %v612_v52, %v615_v58  ;;  %v635_v19 = vsel %vm627_vm4, %v618_v25, %v634_v39  ;;  %v2935_v40 = vsel %vm2402_vm5, 0, %v2401_v47 }
  0x9c   :  { %v556_v29 = vsub.s32 0, %v2923_v34  ;;  %v637_v8 = vsel %vm625_vm2, %v615_v58, %v618_v25  ;;  %v638_v36 = vsel %vm628_vm1, %v624_v26, 1326507024  ;;  %v2946_v45 = vsel %vm334_vm0, %v335_v60, %v333_v63 }
  0x9d   :  { %v363_v46 = vand.u32 2147483648, %v2858_v59  ;;  %v639_v48 = vsel %vm627_vm4, %v621_v50, %v638_v36  ;;  %v700_v47 = vshrl.u32 %v699_v23, 23  ;;  %vm341_vm7 = vcmp.eq.f32.partialorder %v2828_v9, 0.0 }
  0x9e   :  { %vm346_vm8 = vcmp.eq.f32.partialorder %v2842_v43, inf  ;;  %vm353_vm9 = vcmp.eq.f32.partialorder %v2855_v49, inf  ;;  %v2404_v54 = vmin.u32 %v556_v29, %v2923_v34  ;;  %v629_v25 = vsel %vm625_vm2, %v609_v31, %v612_v52  ;;  %v2530_v61 = vpop.eup %2529 }
  0x9f   :  { %v631_v4 = vsel %vm627_vm4, %v615_v58, %v630_v3  ;;  %v636_v60 = vsel %vm626_vm6, %v633_v12, %v635_v19  ;;  %v338_v50 = vmul.f32 %v2526_v56, %v2828_v9  ;;  %vm360_vm10 = vcmp.eq.f32.partialorder %v2858_v59, inf  ;;  %v2532_v23 = vpop.eup %2531 }
  0xa0   :  { %v463_v26 = vsub.s32 4294967266, %v2935_v40  ;;  %v640_v39 = vsel %vm626_vm6, %v637_v8, %v639_v48  ;;  %v2411_v63 = vadd.s32 4294967169, %v700_v47  ;;  %2533 = vrsqrt.f32 %v2870_v11 }
  0xa1   :  { %v558_v52 = vclz %v2404_v54  ;;  %v2968_v58 = vmul.u32.u64.low %v2926_v16, %v640_v39  ;;  %v2969_v31 = vmul.u32.u64.high %v2926_v16, %v640_v39, %v2968_v58  ;;  %v632_v3 = vsel %vm626_vm6, %v629_v25, %v631_v4 }
  0xa2   :  { %v2974_v56 = vmul.u32.u64.low %v2926_v16, %v636_v60  ;;  %v2975_v12 = vmul.u32.u64.high %v2926_v16, %v636_v60, %v2974_v56  ;;  %v706_v19 = vadd.s32 1, %v2411_v63  ;;  %v443_v8 = vadd.s32 %v2803_v30, %v2810_v37 }
  0xa3   :  { %v459_v36 = vsub.s32 32, %v2935_v40  ;;  %v2405_v48 = vadd.s32 4294967294, %v558_v52  ;;  %v340_v47 = vsel %vm339_vm3, %v2828_v9, %v338_v50  ;;  %v345_v21 = vmul.f32 %v2528_v33, %v2842_v43 }
  0xa4   :  { %v464_v54 = vadd.s32 127, %v463_v26  ;;  %vm707_vm11 = vcmp.gt.s32.totalorder %v706_v19, 0  ;;  %v648_v25 = vmul.u32 %v2926_v16, %v632_v3  ;;  %vm650_vm13 = vc.u32 %v2969_v31, %v2974_v56 }
  0xa5   :  { %vm2406_vm12 = vcmp.lt.s32.totalorder %v2405_v48, 0  ;;  %v708_v4 = vsel %vm707_vm11, %v706_v19, 0  ;;  %v352_v30 = vmul.f32 %v2530_v61, %v2855_v49  ;;  %v359_v37 = vmul.f32 %v2532_v23, %v2858_v59 }
  0xa6   :  { %v561_v60 = vsel %vm2406_vm12, 0, %v2405_v48  ;;  %v651_v39 = vadd.s32 1, %v2975_v12  ;;  %v460_v50 = vshll.u32 %v2861_v10, %v2935_v40  ;;  %v461_v33 = vshrl.u32 %v443_v8, %v459_v36 }
  0xa7   :  { %v566_v26 = vsub.s32 4294967266, %v561_v60  ;;  %v710_v63 = vand.u32 31, %v708_v4  ;;  %v465_v52 = vshll.u32 %v464_v54, 23  ;;  %v546_v16 = vadd.s32 %v2846_v44, %v2839_v20 }
  0xa8   :  { %v562_v58 = vsub.s32 32, %v561_v60  ;;  %v652_v3 = vsel %vm650_vm13, %v651_v39, %v2975_v12  ;;  %2535 = vrsqrt.f32 %v2876_v18  ;;  %v3003_v10 = vsel %vm341_vm7, %v342_v53, %v340_v47 }
  0xa9   :  { %v567_v23 = vadd.s32 127, %v566_v26  ;;  %v653_v19 = vadd.s32 %v652_v3, %v648_v25  ;;  %v3008_v40 = vsel %vm346_vm8, %v2842_v43, %v345_v21  ;;  %v3013_v20 = vsel %vm353_vm9, %v2855_v49, %v352_v30 }
  0xaa   :  { %v711_v44 = vsub.s32 32, %v710_v63  ;;  %v2534_v12 = vpop.eup %2533  ;;  %v3018_v8 = vsel %vm360_vm10, %v2858_v59, %v359_v37  ;;  %v462_v9 = vor.u32 %v461_v33, %v460_v50  ;;  %v4045_v36 = vand.u32 2147483647, %v2745_v5 }
  0xab   :  { %v654_v53 = vadd.s32 536870912, %v653_v19  ;;  %v466_v48 = vor.u32 4788187, %v465_v52  ;;  %v563_v47 = vshll.u32 %v2923_v34, %v561_v60  ;;  %v564_v21 = vshrl.u32 %v546_v16, %v562_v58 }
  0xac   :  { %v3022_v54 = vshrl.u32 %v708_v4, 5  ;;  %v568_v25 = vshll.u32 %v567_v23, 23  ;;  %v713_v39 = vshll.u32 %v4063_v22, %v710_v63  ;;  %v716_v26 = vshll.u32 %v4058_v24, %v710_v63 }
  0xad   :  { %v3024_v30 = vshrl.u32 %v654_v53, 30  ;;  %v714_v37 = vshrl.u32 %v4058_v24, %v711_v44  ;;  %v717_v50 = vshrl.u32 %v4054_v27, %v711_v44  ;;  %v722_v33 = vshll.u32 %v4046_v28, %v710_v63 }
  0xae   :  { %v723_v52 = vshrl.u32 %v4056_v32, %v711_v44  ;;  %v703_v4 = vand.u32 8388607, %v4045_v36  ;;  %v719_v60 = vshll.u32 %v4054_v27, %v710_v63  ;;  %v720_v16 = vshrl.u32 %v4046_v28, %v711_v44 }
  0xaf   :  { %v656_v34 = vshll.u32 %v3024_v30, 30  ;;  %v3038_v58 = vmul.f32 %v2534_v12, %v2870_v11  ;;  %v725_v23 = vshll.u32 %v4056_v32, %v710_v63  ;;  %v726_v53 = vshrl.u32 %v4048_v42, %v711_v44 }
  0xb0   :  { %v724_v3 = vor.u32 %v723_v52, %v722_v33  ;;  %v467_v61 = vand.u32 2147483647, %v466_v48  ;;  %v469_v29 = vcvt.s32.f32 %v462_v9  ;;  %vm731_vm14 = vcmp.lt.s32.totalorder %v3022_v54, 4 }
  0xb1   :  { %v3042_v57 = vsub.s32 %v653_v19, %v656_v34  ;;  %vm348_vm15 = vcmp.eq.f32.partialorder %v2842_v43, 0.0  ;;  %vm355_vm0 = vcmp.eq.f32.partialorder %v2855_v49, 0.0  ;;  %vm362_vm1 = vcmp.eq.f32.partialorder %v2858_v59, 0.0 }
  0xb2   :  { %v565_v36 = vor.u32 %v564_v21, %v563_v47  ;;  %v569_v12 = vor.u32 4788187, %v568_v25  ;;  %v715_v28 = vor.u32 %v714_v37, %v713_v39  ;;  %v718_v33 = vor.u32 %v717_v50, %v716_v26  ;;  %v2536_v52 = vpop.eup %2535 }
  0xb3   :  { %vm367_vm2 = vcmp.eq.f32.partialorder %v2870_v11, inf  ;;  %vm389_vm3 = vcmp.lt.s32.totalorder %v2732_v55, 0  ;;  %v659_v63 = vsub.s32 0, %v3042_v57  ;;  %v704_v19 = vor.u32 8388608, %v703_v4 }
  0xb4   :  { %v721_v9 = vor.u32 %v720_v16, %v719_v60  ;;  %vm728_vm4 = vcmp.lt.s32.totalorder %v3022_v54, 1  ;;  %v712_v48 = vshrl.u32 %v4063_v22, %v711_v44  ;;  %v727_v34 = vor.u32 %v726_v53, %v725_v23 }
  0xb5   :  { %vm730_vm5 = vcmp.lt.s32.totalorder %v3022_v54, 3  ;;  %v737_v47 = vsel %vm731_vm14, %v724_v3, 920167782  ;;  %v470_v21 = vmul.f32 %v469_v29, %v467_v61  ;;  %v2408_v25 = vmin.u32 %v659_v63, %v3042_v57 }
  0xb6   :  { %v733_v39 = vsel %vm731_vm14, %v721_v9, 2102212464  ;;  %v802_v26 = vand.u32 2139095040, %v2748_v7  ;;  %vm3062_vm6 = vcmp.le.f32.partialorder %v387_v0, 0.7853982  ;;  %v572_v50 = vcvt.s32.f32 %v565_v36 }
  0xb7   :  { %v570_v44 = vand.u32 2147483647, %v569_v12  ;;  %vm729_vm7 = vcmp.lt.s32.totalorder %v3022_v54, 2  ;;  %v736_v29 = vsel %vm728_vm4, %v715_v28, %v718_v33  ;;  %vm374_vm8 = vcmp.eq.f32.partialorder %v2876_v18, inf }
  0xb8   :  { %v473_v61 = vsub.s32 4, %v2835_v41  ;;  %vm492_vm9 = vcmp.lt.s32.totalorder %v2735_v15, 0  ;;  %v661_v4 = vclz %v2408_v25  ;;  %v738_v0 = vsel %vm730_vm5, %v721_v9, %v737_v47 }
  0xb9   :  { %v740_v60 = vsel %vm728_vm4, %v718_v33, %v721_v9  ;;  %v576_v36 = vsub.s32 4, %v2903_v51  ;;  %v732_v16 = vsel %vm728_vm4, %v712_v48, %v715_v28  ;;  %v734_v23 = vsel %vm730_vm5, %v718_v33, %v733_v39 }
  0xba   :  { %v741_v53 = vsel %vm731_vm14, %v727_v34, 1326507024  ;;  %v2409_v12 = vadd.s32 4294967294, %v661_v4  ;;  %v739_v63 = vsel %vm729_vm7, %v736_v29, %v738_v0  ;;  %v744_v25 = vshll.u32 %v704_v19, 8 }
  0xbb   :  { %v742_v47 = vsel %vm730_vm5, %v724_v3, %v741_v53  ;;  %v471_v9 = vxor.u32 2147483648, %v470_v21  ;;  %vm3089_vm10 = vcmp.le.f32.partialorder %v490_v6, 0.7853982  ;;  %v573_v28 = vmul.f32 %v572_v50, %v570_v44 }
  0xbc   :  { %v743_v33 = vsel %vm729_vm7, %v740_v60, %v742_v47  ;;  %v803_v48 = vshrl.u32 %v802_v26, 23  ;;  %vm2410_vm11 = vcmp.lt.s32.totalorder %v2409_v12, 0  ;;  %v735_v34 = vsel %vm729_vm7, %v732_v16, %v734_v23 }
  0xbd   :  { %v3097_v39 = vmul.u32.u64.low %v744_v25, %v743_v33  ;;  %v3098_v29 = vmul.u32.u64.high %v744_v25, %v743_v33, %v3097_v39  ;;  %v664_v3 = vsel %vm2410_vm11, 0, %v2409_v12  ;;  %v3109_v44 = vsel %vm348_vm15, %v349_v38, %v3008_v40 }
  0xbe   :  { %v3100_v19 = vmul.u32.u64.low %v744_v25, %v739_v63  ;;  %v3101_v4 = vmul.u32.u64.high %v744_v25, %v739_v63, %v3100_v19  ;;  %v2415_v6 = vadd.s32 4294967169, %v803_v48  ;;  %v3116_v54 = vsel %vm355_vm0, %v356_v35, %v3013_v20 }
  0xbf   :  { %v3123_v26 = vsel %vm362_vm1, %v363_v46, %v3018_v8  ;;  %v669_v50 = vsub.s32 4294967266, %v664_v3  ;;  %v3129_v43 = vsel %vm367_vm2, %v2870_v11, %v3038_v58  ;;  %v373_v38 = vmul.f32 %v2536_v52, %v2876_v18 }
  0xc0   :  { %4082 = vst [vmem:[#allocation14_spill] sm:$0xff] %v3123_v26  ;;  %v472_v49 = vsel %vm389_vm3, %v471_v9, %v470_v21  ;;  %v809_v35 = vadd.s32 1, %v2415_v6  ;;  %v474_v40 = vsel %vm389_vm3, %v473_v61, %v2835_v41  ;;  %v574_v59 = vxor.u32 2147483648, %v573_v28 }
  0xc1   :  { %v751_v46 = vmul.u32 %v744_v25, %v735_v34  ;;  %vm753_vm12 = vc.u32 %v3098_v29, %v3100_v19  ;;  %v577_v20 = vsel %vm492_vm9, %v576_v36, %v2903_v51  ;;  %vm595_vm13 = vcmp.lt.s32.totalorder %v2743_v2, 0 }
  0xc2   :  { %v649_v8 = vadd.s32 %v2974_v56, %v2969_v31  ;;  %v754_v58 = vadd.s32 1, %v3101_v4  ;;  %vm810_vm14 = vcmp.gt.s32.totalorder %v809_v35, 0  ;;  %v475_v41 = vsel %vm3062_vm6, %v2732_v55, %v472_v49 }
  0xc3   :  { %v665_v52 = vsub.s32 32, %v664_v3  ;;  %v670_v21 = vadd.s32 127, %v669_v50  ;;  %v811_v61 = vsel %vm810_vm14, %v809_v35, 0  ;;  %v3152_v0 = vsel %vm374_vm8, %v2876_v18, %v373_v38 }
  0xc4   :  { %v3156_v51 = vsel %vm3062_vm6, 0, %v474_v40  ;;  %v755_v31 = vsel %vm753_vm12, %v754_v58, %v3101_v4  ;;  %v813_v56 = vand.u32 31, %v811_v61  ;;  %v575_v36 = vsel %vm492_vm9, %v574_v59, %v573_v28 }
  0xc5   :  { %v3160_v60 = vand.u32 3, %v3156_v51  ;;  %v3166_v16 = vsel %vm3089_vm10, 0, %v577_v20  ;;  %v756_v23 = vadd.s32 %v755_v31, %v751_v46  ;;  %2537 = vcosq.f32 %v475_v41 }
  0xc6   :  { %v679_v53 = vsub.s32 4, %v3024_v30  ;;  %v4053_v37 = vand.u32 2147483647, %v2748_v7  ;;  %v814_v12 = vsub.s32 32, %v813_v56  ;;  %v666_v63 = vshll.u32 %v3042_v57, %v664_v3 }
  0xc7   :  { %v667_v47 = vshrl.u32 %v649_v8, %v665_v52  ;;  %v671_v25 = vshll.u32 %v670_v21, 23  ;;  %v757_v9 = vadd.s32 536870912, %v756_v23  ;;  %2539 = vsinq.f32 %v475_v41 }
  0xc8   :  { %v3174_v28 = vsel %vm3089_vm10, %v2735_v15, %v575_v36  ;;  %v3176_v33 = vshrl.u32 %v811_v61, 5  ;;  %v816_v48 = vshll.u32 %v4063_v22, %v813_v56  ;;  %v817_v39 = vshrl.u32 %v4058_v24, %v814_v12 }
  0xc9   :  { %v3179_v34 = vshrl.u32 %v757_v9, 30  ;;  %v819_v4 = vshll.u32 %v4058_v24, %v813_v56  ;;  %v820_v57 = vshrl.u32 %v4054_v27, %v814_v12  ;;  %v822_v3 = vshll.u32 %v4054_v27, %v813_v56 }
  0xca   :  { %v4083_v6 = vmov 2102212464   ;;  %v826_v38 = vshrl.u32 %v4056_v32, %v814_v12  ;;  %v668_v49 = vor.u32 %v667_v47, %v666_v63  ;;  %v672_v35 = vor.u32 4788187, %v671_v25 }
  0xcb   :  { %v823_v50 = vshrl.u32 %v4083_v6, %v814_v12  ;;  %v825_v42 = vshll.u32 %v4083_v6, %v813_v56  ;;  %v3191_v40 = vsel %vm595_vm13, %v679_v53, %v3024_v30  ;;  %v759_v59 = vshll.u32 %v3179_v34, 30 }
  0xcc   :  { %2541 = vcosq.f32 %v3174_v28  ;;  %v806_v46 = vand.u32 8388607, %v4053_v37  ;;  %v828_v20 = vshll.u32 %v4056_v32, %v813_v56  ;;  %v4084_v8 = vmov 1326507024  }
  0xcd   :  { %v829_v58 = vshrl.u32 %v4084_v8, %v814_v12  ;;  %v3199_v41 = vsub.s32 %v756_v23, %v759_v59  ;;  %v815_v52 = vshrl.u32 %v4063_v22, %v814_v12  ;;  %v818_v21 = vor.u32 %v817_v39, %v816_v48 }
  0xce   :  { %v821_v61 = vor.u32 %v820_v57, %v819_v4  ;;  %v824_v31 = vor.u32 %v823_v50, %v822_v3  ;;  %v827_v30 = vor.u32 %v826_v38, %v825_v42  ;;  %vm831_vm15 = vcmp.lt.s32.totalorder %v3176_v33, 1 }
  0xcf   :  { %v830_v36 = vor.u32 %v829_v58, %v828_v20  ;;  %v673_v53 = vand.u32 2147483647, %v672_v35  ;;  %v675_v63 = vcvt.s32.f32 %v668_v49  ;;  %v762_v47 = vsub.s32 0, %v3199_v41  ;;  %v3205_v56 = vpop.eup %2537 }
  0xd0   :  { %vm834_vm0 = vcmp.lt.s32.totalorder %v3176_v33, 4  ;;  %vm485_vm1 = vcmp.eq.s32.totalorder %v3160_v60, 2  ;;  %v807_v23 = vor.u32 8388608, %v806_v46  ;;  %vm833_vm2 = vcmp.lt.s32.totalorder %v3176_v33, 3 }
  0xd1   :  { %v836_v12 = vsel %vm834_vm0, %v824_v31, 2102212464  ;;  %v905_v25 = vand.u32 2139095040, %v2752_v13  ;;  %vm482_vm3 = vcmp.eq.s32.totalorder %v3160_v60, 0  ;;  %v4085_v9 = vand.u32 2147483647, %v2743_v2  ;;  %v3225_v3 = vpop.eup %2539 }
  0xd2   :  { %v2412_v39 = vmin.u32 %v762_v47, %v3199_v41  ;;  %vm832_vm5 = vcmp.lt.s32.totalorder %v3176_v33, 2  ;;  %v835_v4 = vsel %vm831_vm15, %v815_v52, %v818_v21  ;;  %v839_v57 = vsel %vm831_vm15, %v818_v21, %v821_v61 }
  0xd3   :  { %vm3215_vm4 = vcmp.le.f32.partialorder %v4085_v9, 0.7853982  ;;  %v837_v50 = vsel %vm833_vm2, %v821_v61, %v836_v12  ;;  %v840_v42 = vsel %vm834_vm0, %v827_v30, 920167782  ;;  %v843_v38 = vsel %vm831_vm15, %v821_v61, %v824_v31 }
  0xd4   :  { %v844_v49 = vsel %vm834_vm0, %v830_v36, 1326507024  ;;  %vm369_vm6 = vcmp.eq.f32.partialorder %v2870_v11, 0.0  ;;  %vm376_vm7 = vcmp.eq.f32.partialorder %v2876_v18, 0.0  ;;  %v676_v35 = vmul.f32 %v675_v63, %v673_v53 }
  0xd5   :  { %v764_v59 = vclz %v2412_v39  ;;  %v841_v46 = vsel %vm833_vm2, %v824_v31, %v840_v42  ;;  %v845_v20 = vsel %vm833_vm2, %v827_v30, %v844_v49  ;;  %vm481_vm8 = vcmp.lt.s32.totalorder %v3160_v60, 2 }
  0xd6   :  { %v842_v58 = vsel %vm832_vm5, %v839_v57, %v841_v46  ;;  %v846_v52 = vsel %vm832_vm5, %v843_v38, %v845_v20  ;;  %v847_v21 = vshll.u32 %v807_v23, 8  ;;  %v906_v61 = vshrl.u32 %v905_v25, 23  ;;  %v3250_v47 = vpop.eup %2541 }
  0xd7   :  { %v4051_v36 = vxor.u32 2147483648, %v3225_v3  ;;  %v4050_v53 = vxor.u32 2147483648, %v3205_v56  ;;  %v2413_v63 = vadd.s32 4294967294, %v764_v59  ;;  %v838_v31 = vsel %vm832_vm5, %v835_v4, %v837_v50 }
  0xd8   :  { %v3252_v30 = vmul.u32.u64.low %v847_v21, %v846_v52  ;;  %v3253_v12 = vmul.u32.u64.high %v847_v21, %v846_v52, %v3252_v30  ;;  %v3255_v9 = vmul.u32.u64.low %v847_v21, %v842_v58  ;;  %v3256_v39 = vmul.u32.u64.high %v847_v21, %v842_v58, %v3255_v9 }
  0xd9   :  { %2543 = vsinq.f32 %v3174_v28  ;;  %v752_v23 = vadd.s32 %v3100_v19, %v3098_v29  ;;  %vm2414_vm9 = vcmp.lt.s32.totalorder %v2413_v63, 0  ;;  %v2419_v25 = vadd.s32 4294967169, %v906_v61 }
  0xda   :  { %v677_v57 = vxor.u32 2147483648, %v676_v35  ;;  %v767_v42 = vsel %vm2414_vm9, 0, %v2413_v63  ;;  %v854_v33 = vmul.u32 %v847_v21, %v838_v31  ;;  %v4052_v4 = vand.u32 2147483647, %v2752_v13 }
  0xdb   :  { %v768_v50 = vsub.s32 32, %v767_v42  ;;  %v769_v38 = vshll.u32 %v3199_v41, %v767_v42  ;;  %v772_v49 = vsub.s32 4294967266, %v767_v42  ;;  %v912_v59 = vadd.s32 1, %v2419_v25 }
  0xdc   :  { %v3265_v46 = vand.u32 3, %v3166_v16  ;;  %v3270_v28 = vsel %vm3215_vm4, 0, %v3191_v40  ;;  %vm856_vm10 = vc.u32 %v3253_v12, %v3255_v9  ;;  %v857_v29 = vadd.s32 1, %v3256_v39 }
  0xdd   :  { %v487_v19 = vsel %vm485_vm1, %v4050_v53, %v3225_v3  ;;  %v770_v41 = vshrl.u32 %v752_v23, %v768_v50  ;;  %v773_v20 = vadd.s32 127, %v772_v49  ;;  %vm913_vm11 = vcmp.gt.s32.totalorder %v912_v59, 0 }
  0xde   :  { %v484_v40 = vsel %vm482_vm3, %v3205_v56, %v4051_v36  ;;  %v858_v58 = vsel %vm856_vm10, %v857_v29, %v3256_v39  ;;  %v909_v52 = vand.u32 8388607, %v4052_v4  ;;  %v914_v21 = vsel %vm913_vm11, %v912_v59, 0 }
  0xdf   :  { %v678_v61 = vsel %vm595_vm13, %v677_v57, %v676_v35  ;;  %v771_v63 = vor.u32 %v770_v41, %v769_v38  ;;  %v774_v31 = vshll.u32 %v773_v20, 23  ;;  %v859_v30 = vadd.s32 %v858_v58, %v854_v33 }
  0xe0   :  { %v4088_v23 = vand.u32 2147483648, %v2870_v11  ;;  %v4090_v39 = vand.u32 2147483648, %v2876_v18  ;;  %v3305_v50 = vand.u32 3, %v3270_v28  ;;  %v916_v35 = vand.u32 31, %v914_v21 }
  0xe1   :  { %v3309_v57 = vsel %vm481_vm8, %v484_v40, %v487_v19  ;;  %vm588_vm12 = vcmp.eq.s32.totalorder %v3265_v46, 2  ;;  %v4060_v11 = vxor.u32 2147483648, %v3250_v47  ;;  %v860_v33 = vadd.s32 536870912, %v859_v30 }
  0xe2   :  { %v3295_v25 = vsel %vm369_vm6, %v4088_v23, %v3129_v43  ;;  %v3302_v42 = vsel %vm376_vm7, %v4090_v39, %v3152_v0  ;;  %v775_v43 = vor.u32 4788187, %v774_v31  ;;  %v681_v18 = vsel %vm3215_vm4, %v2743_v2, %v678_v61 }
  0xe3   :  { %4089 = vst [vmem:[#allocation15_spill] sm:$0xff] %v3295_v25  ;;  %4091 = vst [vmem:[#allocation16_spill] sm:$0xff] %v3302_v42  ;;  %v910_v0 = vor.u32 8388608, %v909_v52  ;;  %v3316_v38 = vshrl.u32 %v914_v21, 5  ;;  %v917_v49 = vsub.s32 32, %v916_v35  ;;  %v3318_v59 = vpop.eup %2543  ;;  %v778_v29 = vcvt.s32.f32 %v771_v63 }
  0xe4   :  { %v3320_v60 = vshrl.u32 %v860_v33, 30  ;;  %v919_v19 = vshll.u32 %v4063_v22, %v916_v35  ;;  %v922_v41 = vshll.u32 %v4058_v24, %v916_v35  ;;  %v776_v20 = vand.u32 2147483647, %v775_v43 }
  0xe5   :  { %v920_v40 = vshrl.u32 %v4058_v24, %v917_v49  ;;  %v923_v58 = vshrl.u32 %v4054_v27, %v917_v49  ;;  %v928_v48 = vshll.u32 %v4083_v6, %v916_v35  ;;  %vm585_vm13 = vcmp.eq.s32.totalorder %v3265_v46, 0 }
  0xe6   :  { %v862_v52 = vshll.u32 %v3320_v60, 30  ;;  %v925_v21 = vshll.u32 %v4054_v27, %v916_v35  ;;  %v926_v61 = vshrl.u32 %v4083_v6, %v917_v49  ;;  %v929_v63 = vshrl.u32 %v4056_v32, %v917_v49 }
  0xe7   :  { %v4061_v31 = vxor.u32 2147483648, %v3318_v59  ;;  %v931_v23 = vshll.u32 %v4056_v32, %v916_v35  ;;  %v932_v39 = vshrl.u32 %v4084_v8, %v917_v49  ;;  %v1008_v43 = vand.u32 2139095040, %v2754_v14 }
  0xe8   :  { %vm698_vm14 = vcmp.lt.s32.totalorder %v2745_v5, 0  ;;  %v3337_v33 = vsub.s32 %v859_v30, %v862_v52  ;;  %v918_v53 = vshrl.u32 %v4063_v22, %v917_v49  ;;  %v921_v36 = vor.u32 %v920_v40, %v919_v19 }
  0xe9   :  { %v924_v4 = vor.u32 %v923_v58, %v922_v41  ;;  %2545 = vcosq.f32 %v681_v18  ;;  %v779_v37 = vmul.f32 %v778_v29, %v776_v20  ;;  %v930_v27 = vor.u32 %v929_v63, %v928_v48 }
  0xea   :  { %vm934_vm15 = vcmp.lt.s32.totalorder %v3316_v38, 1  ;;  %vm479_vm0 = vweird.f32 %v2732_v55  ;;  %2547 = vsinq.f32 %v681_v18  ;;  %v865_v35 = vsub.s32 0, %v3337_v33 }
  0xeb   :  { %v927_v32 = vor.u32 %v926_v61, %v925_v21  ;;  %v3343_v24 = vshll.u32 %v910_v0, 8  ;;  %vm584_vm1 = vcmp.lt.s32.totalorder %v3265_v46, 2  ;;  %v933_v30 = vor.u32 %v932_v39, %v931_v23 }
  0xec   :  { %vm936_vm2 = vcmp.lt.s32.totalorder %v3316_v38, 3  ;;  %vm937_vm3 = vcmp.lt.s32.totalorder %v3316_v38, 4  ;;  %v1009_v49 = vshrl.u32 %v1008_v43, 23  ;;  %v4092_v29 = vand.u32 2147483647, %v2745_v5 }
  0xed   :  { %v2416_v18 = vmin.u32 %v865_v35, %v3337_v33  ;;  %vm935_vm5 = vcmp.lt.s32.totalorder %v3316_v38, 2  ;;  %v938_v0 = vsel %vm934_vm15, %v918_v53, %v921_v36  ;;  %v942_v41 = vsel %vm934_vm15, %v921_v36, %v924_v4 }
  0xee   :  { %vm3350_vm4 = vcmp.le.f32.partialorder %v4092_v29, 0.7853982  ;;  %v590_v20 = vsel %vm588_vm12, %v4060_v11, %v3318_v59  ;;  %v780_v40 = vxor.u32 2147483648, %v779_v37  ;;  %v939_v58 = vsel %vm937_vm3, %v927_v32, 2102212464 }
  0xef   :  { %v943_v48 = vsel %vm937_vm3, %v930_v27, 920167782  ;;  %v867_v52 = vclz %v2416_v18  ;;  %v940_v53 = vsel %vm936_vm2, %v924_v4, %v939_v58  ;;  %v946_v21 = vsel %vm934_vm15, %v924_v4, %v927_v32 }
  0xf0   :  { %v944_v36 = vsel %vm936_vm2, %v927_v32, %v943_v48  ;;  %v941_v61 = vsel %vm935_vm5, %v938_v0, %v940_v53  ;;  %v947_v23 = vsel %vm937_vm3, %v933_v30, 1326507024  ;;  %v2423_v39 = vadd.s32 4294967169, %v1009_v49 }
  0xf1   :  { %v945_v63 = vsel %vm935_vm5, %v942_v41, %v944_v36  ;;  %v2417_v43 = vadd.s32 4294967294, %v867_v52  ;;  %v948_v35 = vsel %vm936_vm2, %v930_v27, %v947_v23  ;;  %v587_v32 = vsel %vm585_vm13, %v3250_v47, %v4061_v31 }
  0xf2   :  { %v3384_v29 = vmul.u32.u64.low %v3343_v24, %v945_v63  ;;  %v3385_v18 = vmul.u32.u64.high %v3343_v24, %v945_v63, %v3384_v29  ;;  %v782_v4 = vsub.s32 4, %v3179_v34  ;;  %v949_v30 = vsel %vm935_vm5, %v946_v21, %v948_v35 }
  0xf3   :  { %v1015_v49 = vadd.s32 1, %v2423_v39  ;;  %v855_v27 = vadd.s32 %v3255_v9, %v3253_v12  ;;  %vm2418_vm6 = vcmp.lt.s32.totalorder %v2417_v43, 0  ;;  %v3402_v58 = vpop.eup %2545  ;;  %v781_v48 = vsel %vm698_vm14, %v780_v40, %v779_v37 }
  0xf4   :  { %v3399_v0 = vmul.u32.u64.low %v3343_v24, %v949_v30  ;;  %v3400_v41 = vmul.u32.u64.high %v3343_v24, %v949_v30, %v3399_v0  ;;  %v870_v52 = vsel %vm2418_vm6, 0, %v2417_v43  ;;  %v957_v53 = vmul.u32 %v3343_v24, %v941_v61  ;;  %v3407_v38 = vpop.eup %2547 }
  0xf5   :  { %vm1016_vm7 = vcmp.gt.s32.totalorder %v1015_v49, 0  ;;  %vm688_vm8 = vcmp.eq.s32.totalorder %v3305_v50, 0  ;;  %v871_v36 = vsub.s32 32, %v870_v52  ;;  %v872_v12 = vshll.u32 %v3337_v33, %v870_v52 }
  0xf6   :  { %v875_v9 = vsub.s32 4294967266, %v870_v52  ;;  %v960_v21 = vadd.s32 1, %v3385_v18  ;;  %v3415_v63 = vsel %vm479_vm0, nan, %v3309_v57  ;;  %vm691_vm9 = vcmp.eq.s32.totalorder %v3305_v50, 2 }
  0xf7   :  { %v783_v24 = vsel %vm698_vm14, %v782_v4, %v3179_v34  ;;  %v1017_v37 = vsel %vm1016_vm7, %v1015_v49, 0  ;;  %vm582_vm10 = vweird.f32 %v2735_v15  ;;  %v591_v33 = vsel %vm584_vm1, %v587_v32, %v590_v20 }
  0xf8   :  { %v873_v40 = vshrl.u32 %v855_v27, %v871_v36  ;;  %v876_v61 = vadd.s32 127, %v875_v9  ;;  %vm959_vm11 = vc.u32 %v3400_v41, %v3384_v29  ;;  %vm687_vm12 = vcmp.lt.s32.totalorder %v3305_v50, 2 }
  0xf9   :  { %v784_v57 = vsel %vm3350_vm4, %v2745_v5, %v781_v48  ;;  %v961_v23 = vsel %vm959_vm11, %v960_v21, %v3385_v18  ;;  %v4062_v34 = vand.u32 2147483647, %v2754_v14  ;;  %v1019_v39 = vand.u32 31, %v1017_v37 }
  0xfa   :  { %v3434_v46 = vsel %vm3350_vm4, 0, %v783_v24  ;;  %v874_v20 = vor.u32 %v873_v40, %v872_v12  ;;  %v877_v43 = vshll.u32 %v876_v61, 23  ;;  %v962_v35 = vadd.s32 %v961_v23, %v957_v53 }
  0xfb   :  { %v4071_v32 = vxor.u32 2147483648, %v3407_v38  ;;  %v4066_v4 = vxor.u32 2147483648, %v3402_v58  ;;  %v3439_v30 = vand.u32 3, %v3434_v46  ;;  %v1020_v49 = vsub.s32 32, %v1019_v39 }
  0xfc   :  { %2549 = vcosq.f32 %v784_v57  ;;  %v878_v18 = vor.u32 4788187, %v877_v43  ;;  %v881_v27 = vcvt.s32.f32 %v874_v20  ;;  %v963_v0 = vadd.s32 536870912, %v962_v35 }
  0xfd   :  { %2551 = vsinq.f32 %v784_v57  ;;  %vm801_vm13 = vcmp.lt.s32.totalorder %v2748_v7, 0  ;;  %v1012_v19 = vand.u32 8388607, %v4062_v34  ;;  %v1022_v48 = vshll.u32 %v4063_v22, %v1019_v39 }
  0xfe   :  { %v4095_v52 = vmov 2475754826   ;;  %v879_v36 = vand.u32 2147483647, %v878_v18  ;;  %v3446_v12 = vshrl.u32 %v963_v0, 30  ;;  %v1018_v40 = vshrl.u32 %v1017_v37, 5 }
  0xff   :  { %v1025_v53 = vshll.u32 %v4095_v52, %v1019_v39  ;;  %v1023_v9 = vshrl.u32 %v4095_v52, %v1020_v49  ;;  %v4096_v21 = vmov 2131351028   ;;  %v1029_v57 = vshrl.u32 %v4083_v6, %v1020_v49 }
 0x100   :  { %v1026_v24 = vshrl.u32 %v4096_v21, %v1020_v49  ;;  %v1028_v61 = vshll.u32 %v4096_v21, %v1019_v39  ;;  %v1031_v23 = vshll.u32 %v4083_v6, %v1019_v39  ;;  %v693_v20 = vsel %vm691_vm9, %v4066_v4, %v3407_v38 }
 0x101   :  { %v882_v43 = vmul.f32 %v881_v27, %v879_v36  ;;  %v965_v18 = vshll.u32 %v3446_v12, 30  ;;  %v4097_v0 = vmov 920167782   ;;  %v690_v37 = vsel %vm688_vm8, %v3402_v58, %v4071_v32 }
 0x102   :  { %v1032_v11 = vshrl.u32 %v4097_v0, %v1020_v49  ;;  %v1013_v31 = vor.u32 8388608, %v1012_v19  ;;  %v1034_v34 = vshll.u32 %v4097_v0, %v1019_v39  ;;  %v1035_v22 = vshrl.u32 %v4084_v8, %v1020_v49 }
 0x103   :  { %v4098_v42 = vand.u32 2147483647, %v2748_v7  ;;  %v3473_v27 = vsub.s32 %v962_v35, %v965_v18  ;;  %v4101_v36 = vmov 683565275   ;;  %v1024_v25 = vor.u32 %v1023_v9, %v1022_v48 }
 0x104   :  { %v1021_v1 = vshrl.u32 %v4101_v36, %v1020_v49  ;;  %v1027_v55 = vor.u32 %v1026_v24, %v1025_v53  ;;  %v3478_v32 = vsel %vm582_vm10, nan, %v591_v33  ;;  %v1030_v19 = vor.u32 %v1029_v57, %v1028_v61 }
 0x105   :  { %vm3469_vm14 = vcmp.le.f32.partialorder %v4098_v42, 0.7853982  ;;  %v1033_v39 = vor.u32 %v1032_v11, %v1031_v23  ;;  %vm1037_vm15 = vcmp.lt.s32.totalorder %v1018_v40, 1  ;;  %v3482_v26 = vsel %vm687_vm12, %v690_v37, %v693_v20 }
 0x106   :  { %vm791_vm1 = vcmp.eq.s32.totalorder %v3439_v30, 0  ;;  %vm794_vm2 = vcmp.eq.s32.totalorder %v3439_v30, 2  ;;  %v883_v42 = vxor.u32 2147483648, %v882_v43  ;;  %v968_v35 = vsub.s32 0, %v3473_v27  ;;  %v3488_v53 = vpop.eup %2549 }
 0x107   :  { %vm1040_vm3 = vcmp.lt.s32.totalorder %v1018_v40, 4  ;;  %v1036_v49 = vor.u32 %v1035_v22, %v1034_v34  ;;  %vm1039_vm4 = vcmp.lt.s32.totalorder %v1018_v40, 3  ;;  %v1053_v48 = vshll.u32 %v1013_v31, 8  ;;  %v3493_v24 = vpop.eup %2551 }
 0x108   :  { %v1042_v33 = vsel %vm1040_vm3, %v1030_v19, 2102212464  ;;  %v2420_v11 = vmin.u32 %v968_v35, %v3473_v27  ;;  %vm1038_vm5 = vcmp.lt.s32.totalorder %v1018_v40, 2  ;;  %v1041_v50 = vsel %vm1037_vm15, %v1021_v1, %v1024_v25 }
 0x109   :  { %v1045_v9 = vsel %vm1037_vm15, %v1024_v25, %v1027_v55  ;;  %vm790_vm6 = vcmp.lt.s32.totalorder %v3439_v30, 2  ;;  %v885_v61 = vsub.s32 4, %v3320_v60  ;;  %v958_v22 = vadd.s32 %v3384_v29, %v3400_v41 }
 0x10a   :  { %v1043_v31 = vsel %vm1039_vm4, %v1027_v55, %v1042_v33  ;;  %v1046_v34 = vsel %vm1040_vm3, %v1033_v39, 920167782  ;;  %vm685_vm7 = vweird.f32 %v2743_v2  ;;  %v884_v1 = vsel %vm801_vm13, %v883_v42, %v882_v43 }
 0x10b   :  { %vm904_vm8 = vcmp.lt.s32.totalorder %v2752_v13, 0  ;;  %v970_v25 = vclz %v2420_v11  ;;  %v1047_v57 = vsel %vm1039_vm4, %v1030_v19, %v1046_v34  ;;  %v1049_v23 = vsel %vm1037_vm15, %v1027_v55, %v1030_v19 }
 0x10c   :  { %v1044_v20 = vsel %vm1038_vm5, %v1041_v50, %v1043_v31  ;;  %v1048_v29 = vsel %vm1038_vm5, %v1045_v9, %v1047_v57  ;;  %v1050_v41 = vsel %vm1040_vm3, %v1036_v49, 1326507024  ;;  %v1111_v18 = vand.u32 2139095040, %v2759_v17 }
 0x10d   :  { %vm788_vm9 = vweird.f32 %v2745_v5  ;;  %v2421_v37 = vadd.s32 4294967294, %v970_v25  ;;  %v1051_v43 = vsel %vm1039_vm4, %v1033_v39, %v1050_v41  ;;  %v4073_v33 = vxor.u32 2147483648, %v3493_v24 }
 0x10e   :  { %v3513_v42 = vmul.u32.u64.low %v1053_v48, %v1048_v29  ;;  %v3514_v35 = vmul.u32.u64.high %v1053_v48, %v1048_v29, %v3513_v42  ;;  %v4102_v19 = vand.u32 2147483647, %v2752_v13  ;;  %v1052_v49 = vsel %vm1038_vm5, %v1049_v23, %v1051_v43 }
 0x10f   :  { %v1112_v50 = vshrl.u32 %v1111_v18, 23  ;;  %vm2422_vm12 = vcmp.lt.s32.totalorder %v2421_v37, 0  ;;  %v988_v39 = vsub.s32 4, %v3446_v12  ;;  %v887_v34 = vsel %vm3469_vm14, %v2748_v7, %v884_v1 }
 0x110   :  { %vm3521_vm11 = vcmp.le.f32.partialorder %v4102_v19, 0.7853982  ;;  %v3527_v9 = vmul.u32.u64.low %v1053_v48, %v1052_v49  ;;  %v3528_v31 = vmul.u32.u64.high %v1053_v48, %v1052_v49, %v3527_v9  ;;  %v973_v25 = vsel %vm2422_vm12, 0, %v2421_v37 }
 0x111   :  { %v1060_v57 = vmul.u32 %v1053_v48, %v1044_v20  ;;  %v2427_v29 = vadd.s32 4294967169, %v1112_v50  ;;  %v974_v41 = vsub.s32 32, %v973_v25  ;;  %v975_v19 = vshll.u32 %v3473_v27, %v973_v25 }
 0x112   :  { %v978_v55 = vsub.s32 4294967266, %v973_v25  ;;  %v1063_v40 = vadd.s32 1, %v3514_v35  ;;  %v793_v23 = vsel %vm791_vm1, %v3488_v53, %v4073_v33  ;;  %v4105_v18 = vxor.u32 2147483648, %v3488_v53 }
 0x113   :  { %v4074_v48 = vand.u32 2147483647, %v2759_v17  ;;  %v1118_v20 = vadd.s32 1, %v2427_v29  ;;  %v886_v27 = vsel %vm801_vm13, %v885_v61, %v3320_v60  ;;  %v976_v37 = vshrl.u32 %v958_v22, %v974_v41 }
 0x114   :  { %v796_v1 = vsel %vm794_vm2, %v4105_v18, %v3493_v24  ;;  %v979_v43 = vadd.s32 127, %v978_v55  ;;  %vm1062_vm15 = vc.u32 %v3528_v31, %v3513_v42  ;;  %2553 = vcosq.f32 %v887_v34 }
 0x115   :  { %v989_v49 = vsel %vm904_vm8, %v988_v39, %v3446_v12  ;;  %v1064_v50 = vsel %vm1062_vm15, %v1063_v40, %v3514_v35  ;;  %vm1119_vm1 = vcmp.gt.s32.totalorder %v1118_v20, 0  ;;  %v797_v9 = vsel %vm790_vm6, %v793_v23, %v796_v1 }
 0x116   :  { %v977_v25 = vor.u32 %v976_v37, %v975_v19  ;;  %v980_v29 = vshll.u32 %v979_v43, 23  ;;  %v1065_v18 = vadd.s32 %v1064_v50, %v1060_v57  ;;  %v3560_v60 = vsel %vm685_vm7, nan, %v3482_v26 }
 0x117   :  { %v3564_v61 = vsel %vm3469_vm14, 0, %v886_v27  ;;  %v1115_v12 = vand.u32 8388607, %v4074_v48  ;;  %v1120_v22 = vsel %vm1119_vm1, %v1118_v20, 0  ;;  %v3570_v30 = vsel %vm3521_vm11, 0, %v989_v49 }
 0x118   :  { %v981_v35 = vor.u32 4788187, %v980_v29  ;;  %v984_v55 = vcvt.s32.f32 %v977_v25  ;;  %v1066_v39 = vadd.s32 536870912, %v1065_v18  ;;  %v3574_v57 = vsel %vm788_vm9, nan, %v797_v9 }
 0x119   :  { %v3577_v26 = vand.u32 3, %v3564_v61  ;;  %v3580_v4 = vand.u32 3, %v3570_v30  ;;  %v1122_v41 = vand.u32 31, %v1120_v22  ;;  %2555 = vsinq.f32 %v887_v34 }
 0x11a   :  { %v982_v19 = vand.u32 2147483647, %v981_v35  ;;  %v3582_v40 = vshrl.u32 %v1066_v39, 30  ;;  %v3586_v23 = vmul.f32 %v3415_v63, %v2916_v62  ;;  %v1116_v1 = vor.u32 8388608, %v1115_v12 }
 0x11b   :  { %v1123_v20 = vsub.s32 32, %v1122_v41  ;;  %v1125_v27 = vshll.u32 %v4101_v36, %v1122_v41  ;;  %v3591_v37 = vmul.f32 %v3478_v32, %v2946_v45  ;;  %v1128_v34 = vshll.u32 %v4095_v52, %v1122_v41 }
 0x11c   :  { %v985_v43 = vmul.f32 %v984_v55, %v982_v19  ;;  %v1068_v49 = vshll.u32 %v3582_v40, 30  ;;  %v1131_v50 = vshll.u32 %v4096_v21, %v1122_v41  ;;  %v1134_v29 = vshll.u32 %v4083_v6, %v1122_v41 }
 0x11d   :  { %v1126_v9 = vshrl.u32 %v4095_v52, %v1123_v20  ;;  %v1129_v63 = vshrl.u32 %v4096_v21, %v1123_v20  ;;  %v1132_v25 = vshrl.u32 %v4083_v6, %v1123_v20  ;;  %v1121_v32 = vshrl.u32 %v1120_v22, 5 }
 0x11e   :  { %v986_v12 = vxor.u32 2147483648, %v985_v43  ;;  %v3600_v35 = vsub.s32 %v1065_v18, %v1068_v49  ;;  %v1135_v55 = vshrl.u32 %v4097_v0, %v1123_v20  ;;  %v3603_v39 = vpop.eup %2553  ;;  %vm897_vm13 = vcmp.eq.s32.totalorder %v3577_v26, 2 }
 0x11f   :  { %v3608_v19 = vadd.s32 %v3513_v42, %v3528_v31  ;;  %v1124_v52 = vshrl.u32 %v4101_v36, %v1123_v20  ;;  %v1127_v21 = vor.u32 %v1126_v9, %v1125_v27  ;;  %v3611_v33 = vshll.u32 %v1116_v1, 8 }
 0x120   :  { %vm894_vm14 = vcmp.eq.s32.totalorder %v3577_v26, 0  ;;  %v987_v6 = vsel %vm904_vm8, %v986_v12, %v985_v43  ;;  %v1071_v18 = vsub.s32 0, %v3600_v35  ;;  %v1130_v22 = vor.u32 %v1129_v63, %v1128_v34 }
 0x121   :  { %v1133_v49 = vor.u32 %v1132_v25, %v1131_v50  ;;  %v990_v48 = vsel %vm3521_vm11, %v2752_v13, %v987_v6  ;;  %v1136_v42 = vor.u32 %v1135_v55, %v1134_v29  ;;  %v1137_v31 = vshll.u32 %v4097_v0, %v1122_v41 }
 0x122   :  { %v1138_v36 = vshrl.u32 %v4084_v8, %v1123_v20  ;;  %v898_v1 = vxor.u32 2147483648, %v3603_v39  ;;  %2557 = vcosq.f32 %v990_v48  ;;  %v2424_v27 = vmin.u32 %v1071_v18, %v3600_v35 }
 0x123   :  { %vm1140_vm2 = vcmp.lt.s32.totalorder %v1121_v32, 1  ;;  %2559 = vsinq.f32 %v990_v48  ;;  %vm1141_vm3 = vcmp.lt.s32.totalorder %v1121_v32, 2  ;;  %v1312_v34 = vadd.s32 3, %v3156_v51  ;;  %v3625_v50 = vpop.eup %2555 }
 0x124   :  { %v1139_v43 = vor.u32 %v1138_v36, %v1137_v31  ;;  %vm893_vm4 = vcmp.lt.s32.totalorder %v3577_v26, 2  ;;  %v1073_v11 = vclz %v2424_v27  ;;  %vm1142_vm5 = vcmp.lt.s32.totalorder %v1121_v32, 3 }
 0x125   :  { %vm1143_vm6 = vcmp.lt.s32.totalorder %v1121_v32, 4  ;;  %v1144_v0 = vsel %vm1140_vm2, %v1124_v52, %v1127_v21  ;;  %v1148_v41 = vsel %vm1140_vm2, %v1127_v21, %v1130_v22  ;;  %v1152_v9 = vsel %vm1140_vm2, %v1130_v22, %v1133_v49 }
 0x126   :  { %v1145_v8 = vsel %vm1143_vm6, %v1133_v49, 2102212464  ;;  %v1149_v20 = vsel %vm1143_vm6, %v1136_v42, 920167782  ;;  %vm997_vm8 = vcmp.eq.s32.totalorder %v3580_v4, 0  ;;  %vm1000_vm11 = vcmp.eq.s32.totalorder %v3580_v4, 2 }
 0x127   :  { %v2425_v48 = vadd.s32 4294967294, %v1073_v11  ;;  %v1146_v63 = vsel %vm1142_vm5, %v1130_v22, %v1145_v8  ;;  %v1150_v51 = vsel %vm1142_vm5, %v1133_v49, %v1149_v20  ;;  %v1153_v25 = vsel %vm1143_vm6, %v1139_v43, 1326507024 }
 0x128   :  { %vm891_vm12 = vweird.f32 %v2748_v7  ;;  %v895_v29 = vxor.u32 2147483648, %v3625_v50  ;;  %vm1007_vm15 = vcmp.lt.s32.totalorder %v2754_v14, 0  ;;  %v1147_v12 = vsel %vm1141_vm3, %v1144_v0, %v1146_v63 }
 0x129   :  { %v1151_v55 = vsel %vm1141_vm3, %v1148_v41, %v1150_v51  ;;  %v1154_v52 = vsel %vm1142_vm5, %v1136_v42, %v1153_v25  ;;  %vm2426_vm1 = vcmp.lt.s32.totalorder %v2425_v48, 0  ;;  %vm996_vm2 = vcmp.lt.s32.totalorder %v3580_v4, 2 }
 0x12a   :  { %v1155_v21 = vsel %vm1141_vm3, %v1152_v9, %v1154_v52  ;;  %v3640_v6 = vmul.u32.u64.low %v3611_v33, %v1151_v55  ;;  %v3641_v18 = vmul.u32.u64.high %v3611_v33, %v1151_v55, %v3640_v6  ;;  %v1076_v22 = vsel %vm2426_vm1, 0, %v2425_v48 }
 0x12b   :  { %v3646_v49 = vmul.u32.u64.low %v3611_v33, %v1155_v21  ;;  %v3647_v31 = vmul.u32.u64.high %v3611_v33, %v1155_v21, %v3646_v49  ;;  %v3651_v36 = vmul.f32 %v3560_v60, %v3003_v10  ;;  %v899_v32 = vsel %vm897_vm13, %v898_v1, %v3625_v50 }
 0x12c   :  { %v1077_v42 = vsub.s32 32, %v1076_v22  ;;  %v1078_v27 = vshll.u32 %v3600_v35, %v1076_v22  ;;  %v1081_v43 = vsub.s32 4294967266, %v1076_v22  ;;  %v896_v11 = vsel %vm894_vm14, %v3603_v39, %v895_v29  ;;  %v3672_v9 = vpop.eup %2557 }
 0x12d   :  { %v4106_v0 = vand.u32 2147483647, %v2754_v14  ;;  %v1163_v8 = vmul.u32 %v3611_v33, %v1147_v12  ;;  %v1313_v41 = vand.u32 3, %v1312_v34  ;;  %v1416_v20 = vadd.s32 3, %v3166_v16  ;;  %v3678_v25 = vpop.eup %2559 }
 0x12e   :  { %vm4075_vm13 = vweird.f32 %v2752_v13  ;;  %v1079_v35 = vshrl.u32 %v3608_v19, %v1077_v42  ;;  %v1082_v48 = vadd.s32 127, %v1081_v43  ;;  %v1091_v63 = vsub.s32 4, %v3582_v40 }
 0x12f   :  { %vm3666_vm3 = vcmp.le.f32.partialorder %v4106_v0, 0.7853982  ;;  %v1166_v51 = vadd.s32 1, %v3641_v18  ;;  %v1001_v55 = vxor.u32 2147483648, %v3672_v9  ;;  %vm1165_vm14 = vc.u32 %v3647_v31, %v3640_v6 }
 0x130   :  { %v3685_v16 = vmul.f32 %v3574_v57, %v3109_v44  ;;  %v1520_v33 = vadd.s32 3, %v3270_v28  ;;  %v998_v19 = vxor.u32 2147483648, %v3678_v25  ;;  %v1080_v34 = vor.u32 %v1079_v35, %v1078_v27 }
 0x131   :  { %v1083_v12 = vshll.u32 %v1082_v48, 23  ;;  %v1167_v52 = vsel %vm1165_vm14, %v1166_v51, %v3641_v18  ;;  %v900_v21 = vsel %vm893_vm4, %v896_v11, %v899_v32  ;;  %vm1315_vm5 = vcmp.eq.s32.totalorder %v1313_v41, 0 }
 0x132   :  { %v1168_v22 = vadd.s32 %v1167_v52, %v1163_v8  ;;  %v1417_v49 = vand.u32 3, %v1416_v20  ;;  %v1087_v43 = vcvt.s32.f32 %v1080_v34  ;;  %v1092_v57 = vsel %vm1007_vm15, %v1091_v63, %v3582_v40 }
 0x133   :  { %v1084_v42 = vor.u32 4788187, %v1083_v12  ;;  %vm1318_vm6 = vcmp.eq.s32.totalorder %v1313_v41, 2  ;;  %v999_v28 = vsel %vm997_vm8, %v3672_v9, %v998_v19  ;;  %v1002_v26 = vsel %vm1000_vm11, %v1001_v55, %v3678_v25 }
 0x134   :  { %v1169_v18 = vadd.s32 536870912, %v1168_v22  ;;  %v1624_v32 = vadd.s32 3, %v3434_v46  ;;  %v901_v27 = vsel %vm891_vm12, nan, %v900_v21  ;;  %vm1314_vm4 = vcmp.lt.s32.totalorder %v1313_v41, 2 }
 0x135   :  { %v1085_v40 = vand.u32 2147483647, %v1084_v42  ;;  %v1521_v11 = vand.u32 3, %v1520_v33  ;;  %vm1110_vm1 = vcmp.lt.s32.totalorder %v2759_v17, 0  ;;  %v4109_v8 = vxor.u32 2147483648, %v3225_v3 }
 0x136   :  { %v1170_v0 = vshrl.u32 %v1169_v18, 30  ;;  %v4110_v35 = vxor.u32 2147483648, %v3205_v56  ;;  %vm1419_vm8 = vcmp.eq.s32.totalorder %v1417_v49, 0  ;;  %v1003_v46 = vsel %vm996_vm2, %v999_v28, %v1002_v26 }
 0x137   :  { %v1317_v20 = vsel %vm1315_vm5, %v3205_v56, %v4109_v8  ;;  %v1088_v63 = vmul.f32 %v1087_v43, %v1085_v40  ;;  %v1094_v51 = vsel %vm3666_vm3, 0, %v1092_v57  ;;  %vm1422_vm11 = vcmp.eq.s32.totalorder %v1417_v49, 2 }
 0x138   :  { %v1320_v48 = vsel %vm1318_vm6, %v4110_v35, %v3225_v3  ;;  %v3720_v33 = vand.u32 3, %v1094_v51  ;;  %v1171_v34 = vshll.u32 %v1170_v0, 30  ;;  %vm1523_vm14 = vcmp.eq.s32.totalorder %v1521_v11, 0 }
 0x139   :  { %v1625_v12 = vand.u32 3, %v1624_v32  ;;  %v1089_v52 = vxor.u32 2147483648, %v1088_v63  ;;  %v1321_v21 = vsel %vm1314_vm4, %v1317_v20, %v1320_v48  ;;  %vm1418_vm5 = vcmp.lt.s32.totalorder %v1417_v49, 2 }
 0x13a   :  { %v4111_v56 = vxor.u32 2147483648, %v3318_v59  ;;  %v1004_v4 = vsel %vm4075_vm13, nan, %v1003_v46  ;;  %v4112_v42 = vand.u32 2147483647, %v2759_v17  ;;  %v3734_v57 = vsub.s32 %v1168_v22, %v1171_v34 }
 0x13b   :  { %v4115_v41 = vxor.u32 2147483648, %v3250_v47  ;;  %vm1526_vm6 = vcmp.eq.s32.totalorder %v1521_v11, 2  ;;  %v1090_v26 = vsel %vm1007_vm15, %v1089_v52, %v1088_v63  ;;  %v1194_v18 = vsub.s32 4, %v1170_v0 }
 0x13c   :  { %v1421_v3 = vsel %vm1419_vm8, %v3250_v47, %v4111_v56  ;;  %vm3730_vm2 = vcmp.le.f32.partialorder %v4112_v42, 0.7853982  ;;  %vm1522_vm4 = vcmp.lt.s32.totalorder %v1521_v11, 2  ;;  %v4116_v32 = vxor.u32 2147483648, %v3407_v38  ;;  %v4120_v42 = vld [vmem:[#allocation14_spill] sm:$0xff] }
 0x13d   :  { %v1424_v28 = vsel %vm1422_vm11, %v4115_v41, %v3318_v59  ;;  %v1093_v8 = vsel %vm3666_vm3, %v2754_v14, %v1090_v26  ;;  %v1174_v22 = vsub.s32 0, %v3734_v57  ;;  %vm1627_vm8 = vcmp.eq.s32.totalorder %v1625_v12, 0 }
 0x13e   :  { %v1525_v40 = vsel %vm1523_vm14, %v3402_v58, %v4116_v32  ;;  %vm1630_vm13 = vcmp.eq.s32.totalorder %v1625_v12, 2  ;;  %2561 = vcosq.f32 %v1093_v8  ;;  %v4117_v47 = vxor.u32 2147483648, %v3402_v58 }
 0x13f   :  { %v1728_v20 = vadd.s32 3, %v3564_v61  ;;  %v1832_v35 = vadd.s32 3, %v3570_v30  ;;  %2563 = vsinq.f32 %v1093_v8  ;;  %v2428_v48 = vmin.u32 %v1174_v22, %v3734_v57 }
 0x140   :  { %v1528_v59 = vsel %vm1526_vm6, %v4117_v47, %v3407_v38  ;;  %v1425_v46 = vsel %vm1418_vm5, %v1421_v3, %v1424_v28  ;;  %vm1626_vm15 = vcmp.lt.s32.totalorder %v1625_v12, 2  ;;  %vm1103_vm3 = vcmp.eq.s32.totalorder %v3720_v33, 2 }
 0x141   :  { %v1195_v60 = vsel %vm1110_vm1, %v1194_v18, %v1170_v0  ;;  %v4118_v63 = vxor.u32 2147483648, %v3493_v24  ;;  %v4119_v38 = vxor.u32 2147483648, %v3488_v53  ;;  %v1729_v30 = vand.u32 3, %v1728_v20 }
 0x142   :  { %vm1100_vm11 = vcmp.eq.s32.totalorder %v3720_v33, 0  ;;  %v1176_v34 = vclz %v2428_v48  ;;  %v1529_v49 = vsel %vm1522_vm4, %v1525_v40, %v1528_v59  ;;  %v1833_v52 = vand.u32 3, %v1832_v35  ;;  %v2061_v59 = vld [vmem:[#allocation6] sm:$0xff] }
 0x143   :  { %v1629_v58 = vsel %vm1627_vm8, %v3488_v53, %v4118_v63  ;;  %v1632_v61 = vsel %vm1630_vm13, %v4119_v38, %v3493_v24  ;;  %v1936_v56 = vadd.s32 3, %v1094_v51  ;;  %vm1099_vm14 = vcmp.lt.s32.totalorder %v3720_v33, 2 }
 0x144   :  { %v1164_v0 = vadd.s32 %v3640_v6, %v3647_v31  ;;  %v3770_v3 = vmul.f32 %v901_v27, %v3116_v54  ;;  %v3773_v41 = vmul.f32 %v1004_v4, %v4120_v42  ;;  %v1322_v24 = vsel %vm479_vm0, nan, %v1321_v21 }
 0x145   :  { %v2429_v28 = vadd.s32 4294967294, %v1176_v34  ;;  %v1426_v11 = vsel %vm582_vm10, nan, %v1425_v46  ;;  %v1633_v51 = vsel %vm1626_vm15, %v1629_v58, %v1632_v61  ;;  %vm1731_vm13 = vcmp.eq.s32.totalorder %v1729_v30, 0 }
 0x146   :  { %vm1097_vm5 = vweird.f32 %v2754_v14  ;;  %v1197_v6 = vsel %vm3730_vm2, 0, %v1195_v60  ;;  %v1530_v31 = vsel %vm685_vm7, nan, %v1529_v49  ;;  %vm1734_vm6 = vcmp.eq.s32.totalorder %v1729_v30, 2 }
 0x147   :  { %v1937_v27 = vand.u32 3, %v1936_v56  ;;  %vm2430_vm4 = vcmp.lt.s32.totalorder %v2429_v28, 0  ;;  %v3785_v4 = vand.u32 3, %v1197_v6  ;;  %vm1835_vm0 = vcmp.eq.s32.totalorder %v1833_v52, 0 }
 0x148   :  { %vm1838_vm8 = vcmp.eq.s32.totalorder %v1833_v52, 2  ;;  %v1179_v15 = vsel %vm2430_vm4, 0, %v2429_v28  ;;  %v1634_v12 = vsel %vm788_vm9, nan, %v1633_v51  ;;  %vm1730_vm10 = vcmp.lt.s32.totalorder %v1729_v30, 2  ;;  %v2562_v40 = vpop.eup %2561 }
 0x149   :  { %v1733_v21 = vsel %vm1731_vm13, %v3603_v39, %v895_v29  ;;  %v1180_v26 = vsub.s32 32, %v1179_v15  ;;  %v1181_v2 = vshll.u32 %v3734_v57, %v1179_v15  ;;  %v1184_v18 = vsub.s32 4294967266, %v1179_v15  ;;  %v2564_v29 = vpop.eup %2563 }
 0x14a   :  { %v1736_v32 = vsel %vm1734_vm6, %v898_v1, %v3625_v50  ;;  %vm1834_vm7 = vcmp.lt.s32.totalorder %v1833_v52, 2  ;;  %v1837_v5 = vsel %vm1835_vm0, %v3672_v9, %v998_v19  ;;  %v1840_v8 = vsel %vm1838_vm8, %v1001_v55, %v3678_v25  ;;  %v2062_v9 = vld [vmem:[#allocation6 + $0x8] sm:$0xff] }
 0x14b   :  { %vm1942_vm9 = vcmp.eq.s32.totalorder %v1937_v27, 2  ;;  %v1104_v22 = vxor.u32 2147483648, %v2562_v40  ;;  %v1182_v47 = vshrl.u32 %v1164_v0, %v1180_v26  ;;  %v1185_v57 = vadd.s32 127, %v1184_v18 }
 0x14c   :  { %vm1939_vm15 = vcmp.eq.s32.totalorder %v1937_v27, 0  ;;  %v1101_v20 = vxor.u32 2147483648, %v2564_v29  ;;  %v1737_v39 = vsel %vm1730_vm10, %v1733_v21, %v1736_v32  ;;  %vm1938_vm13 = vcmp.lt.s32.totalorder %v1937_v27, 2  ;;  %v4123_v27 = vld [vmem:[#allocation15_spill] sm:$0xff] }
 0x14d   :  { %v2040_v1 = vadd.s32 3, %v1197_v6  ;;  %v1105_v50 = vsel %vm1103_vm3, %v1104_v22, %v2564_v29  ;;  %v1183_v19 = vor.u32 %v1182_v47, %v1181_v2  ;;  %v1186_v35 = vshll.u32 %v1185_v57, 23  ;;  %v3869_v32 = vld [vmem:[#allocation3 + $0x8] sm:$0xff] }
 0x14e   :  { %v1944_v48 = vsel %vm1942_vm9, %v1104_v22, %v2564_v29  ;;  %v1102_v25 = vsel %vm1100_vm11, %v2562_v40, %v1101_v20  ;;  %v1841_v55 = vsel %vm1834_vm7, %v1837_v5, %v1840_v8  ;;  %v1941_v46 = vsel %vm1939_vm15, %v2562_v40, %v1101_v20 }
 0x14f   :  { %v2063_v60 = vmul.f32 0.5, %v2061_v59  ;;  %v1106_v63 = vsel %vm1099_vm14, %v1102_v25, %v1105_v50  ;;  %v1187_v58 = vor.u32 4788187, %v1186_v35  ;;  %v1190_v38 = vcvt.s32.f32 %v1183_v19 }
 0x150   :  { %v1945_v61 = vsel %vm1938_vm13, %v1941_v46, %v1944_v48  ;;  %v1738_v30 = vsel %vm891_vm12, nan, %v1737_v39  ;;  %v3813_v34 = vmul.f32 %v1322_v24, %v2916_v62  ;;  %v2064_v49 = vmul.f32 0.5, %v2062_v9 }
 0x151   :  { %v2065_v56 = vmul.f32 1.442695, %v2063_v60  ;;  %v1107_v52 = vsel %vm1097_vm5, nan, %v1106_v63  ;;  %v1188_v0 = vand.u32 2147483647, %v1187_v58  ;;  %vm4122_vm3 = vweird.f32 %v2752_v13 }
 0x152   :  { %v1842_v53 = vsel %vm4122_vm3, nan, %v1841_v55  ;;  %v1946_v33 = vsel %vm1097_vm5, nan, %v1945_v61  ;;  %v3821_v28 = vand.u32 3, %v2040_v1  ;;  %v3824_v7 = vmul.f32 %v1426_v11, %v2946_v45  ;;  %v3844_v11 = vld [vmem:[#allocation3] sm:$0xff] }
 0x153   :  { %2565 = vpow2.f32 %v2065_v56  ;;  %v2067_v62 = vmul.f32 1.442695, %v2064_v49  ;;  %v1191_v24 = vmul.f32 %v1190_v38, %v1188_v0  ;;  %v3827_v51 = vmul.f32 %v1530_v31, %v3003_v10  ;;  %v4124_v31 = vld [vmem:[#allocation12_spill] sm:$0xff] }
 0x154   :  { %v3830_v6 = vmul.f32 %v1634_v12, %v3109_v44  ;;  %v3833_v13 = vmul.f32 %v1738_v30, %v3116_v54  ;;  %v3836_v14 = vmul.f32 %v1107_v52, %v4123_v27  ;;  %v3839_v15 = vmul.f32 %v1842_v53, %v4120_v42 }
 0x155   :  { %v3842_v45 = vmul.f32 %v1946_v33, %v4123_v27  ;;  %2567 = vpow2.f32 %v2067_v62  ;;  %v1192_v10 = vxor.u32 2147483648, %v1191_v24  ;;  %v3847_v21 = vsub.s32 0, %v4124_v31 }
 0x156   :  { %v3850_v44 = vsub.s32 1, %v4124_v31  ;;  %v3853_v54 = vsub.s32 2, %v4124_v31  ;;  %v3856_v12 = vsub.s32 3, %v4124_v31  ;;  %v3859_v42 = vsub.s32 4, %v4124_v31 }
 0x157   :  { %v3862_v26 = vsub.s32 5, %v4124_v31  ;;  %v3865_v2 = vsub.s32 6, %v4124_v31  ;;  %v1193_v18 = vsel %vm1110_vm1, %v1192_v10, %v1191_v24  ;;  %v3872_v40 = vsub.s32 7, %v4124_v31 }
 0x158   :  { %v2172_v5 = vrot.slane %v3844_v11, %v3847_v21  ;;  %v2176_v8 = vrot.slane %v3844_v11, %v3850_v44  ;;  %v1196_v29 = vsel %vm3730_vm2, %v2759_v17, %v1193_v18  ;;  %v2180_v22 = vrot.slane %v3844_v11, %v3853_v54 }
 0x159   :  { %v2184_v47 = vrot.slane %v3844_v11, %v3856_v12  ;;  %v2188_v57 = vrot.slane %v3844_v11, %v3859_v42  ;;  %2569 = vcosq.f32 %v1196_v29  ;;  %v2192_v59 = vrot.slane %v3844_v11, %v3862_v26 }
 0x15a   :  { %v2196_v20 = vrot.slane %v3844_v11, %v3865_v2  ;;  %2571 = vsinq.f32 %v1196_v29  ;;  %v2204_v39 = vrot.slane %v3869_v32, %v3847_v21  ;;  %v2653_v1 = vmov 1966171168  }
 0x15b   :  { %v3895_v50 = vunpack.c.l.s4 %v2653_v1  ;;  %vm1206_vm12 = vcmp.eq.s32.totalorder %v3785_v4, 2  ;;  %vm2046_vm1 = vcmp.eq.s32.totalorder %v3821_v28, 2  ;;  %vm1203_vm2 = vcmp.eq.s32.totalorder %v3785_v4, 0 }
 0x15c   :  { %vm2043_vm11 = vcmp.eq.s32.totalorder %v3821_v28, 0  ;;  %vm1202_vm14 = vcmp.lt.s32.totalorder %v3785_v4, 2  ;;  %vm2042_vm5 = vcmp.lt.s32.totalorder %v3821_v28, 2  ;;  %vm1200_vm6 = vweird.f32 %v2759_v17 }
 0x15d   :  { %v3907_v25 = vpop.eup %2565  ;;  %v4127_v4 = vrot.slane %v3869_v32, %v3856_v12  ;;  %v4128_v28 = vrot.slane %v3869_v32, %v3859_v42  ;;  %v4131_v17 = vrot.slane %v3869_v32, %v3865_v2 }
 0x15e   :  { %v2074_v58 = vrot.slane %v3907_v25, %v3847_v21  ;;  %v2078_v38 = vrot.slane %v3907_v25, %v3850_v44  ;;  %v2082_v61 = vrot.slane %v3907_v25, %v3853_v54  ;;  %v2086_v30 = vrot.slane %v3907_v25, %v3856_v12 }
 0x15f   :  { %v2568_v49 = vpop.eup %2567  ;;  %v2090_v56 = vrot.slane %v3907_v25, %v3859_v42  ;;  %v2094_v52 = vrot.slane %v3907_v25, %v3862_v26  ;;  %v2098_v0 = vrot.slane %v3907_v25, %v3865_v2  ;;  %v2102_v53 = vrot.slane %v3907_v25, %v3872_v40 }
 0x160   :  { %v2106_v33 = vrot.slane %v2568_v49, %v3847_v21  ;;  %v2110_v62 = vrot.slane %v2568_v49, %v3850_v44  ;;  %v2114_v24 = vrot.slane %v2568_v49, %v3853_v54  ;;  %v2118_v27 = vrot.slane %v2568_v49, %v3856_v12 }
 0x161   :  { %v2122_v10 = vrot.slane %v2568_v49, %v3859_v42  ;;  %v2126_v18 = vrot.slane %v2568_v49, %v3862_v26  ;;  %v2130_v29 = vrot.slane %v2568_v49, %v3865_v2  ;;  %v2134_v1 = vrot.slane %v2568_v49, %v3872_v40 }
 0x162   :  { %v2151_v60 = vmul.f32 %v2074_v58, %v3586_v23  ;;  %v2152_v25 = vmul.f32 %v2078_v38, %v3591_v37  ;;  %v2153_v43 = vmul.f32 %v2082_v61, %v3651_v36  ;;  %v2154_v63 = vmul.f32 %v2086_v30, %v3685_v16 }
 0x163   :  { %v2155_v46 = vmul.f32 %v2090_v56, %v3770_v3  ;;  %v2156_v55 = vmul.f32 %v2094_v52, %v3773_v41  ;;  %v2157_v9 = vmul.f32 %v2098_v0, %v3836_v14  ;;  %v2159_v48 = vmul.f32 %v2106_v33, %v3813_v34  ;;  %v2570_v35 = vpop.eup %2569 }
 0x164   :  { %v2160_v19 = vmul.f32 %v2110_v62, %v3824_v7  ;;  %v2161_v49 = vmul.f32 %v2114_v24, %v3827_v51  ;;  %v2162_v23 = vmul.f32 %v2118_v27, %v3830_v6  ;;  %v2163_v37 = vmul.f32 %v2122_v10, %v3833_v13  ;;  %v2572_v36 = vpop.eup %2571 }
 0x165   :  { %v1207_v58 = vxor.u32 2147483648, %v2570_v35  ;;  %v2164_v16 = vmul.f32 %v2126_v18, %v3839_v15  ;;  %v2165_v3 = vmul.f32 %v2130_v29, %v3842_v45  ;;  %v2249_v41 = vadd.f32 %v2172_v5, %v2151_v60 }
 0x166   :  { %v1204_v34 = vxor.u32 2147483648, %v2572_v36  ;;  %v2250_v7 = vadd.f32 %v2176_v8, %v2152_v25  ;;  %v2251_v51 = vadd.f32 %v2180_v22, %v2153_v43  ;;  %v2252_v6 = vadd.f32 %v2184_v47, %v2154_v63 }
 0x167   :  { %v1208_v13 = vsel %vm1206_vm12, %v1207_v58, %v2572_v36  ;;  %v2048_v14 = vsel %vm2046_vm1, %v1207_v58, %v2572_v36  ;;  %v2253_v15 = vadd.f32 %v2188_v57, %v2155_v46  ;;  %v2254_v45 = vadd.f32 %v2192_v59, %v2156_v55 }
 0x168   :  { %v1205_v5 = vsel %vm1203_vm2, %v2570_v35, %v1204_v34  ;;  %v2045_v8 = vsel %vm2043_vm11, %v2570_v35, %v1204_v34  ;;  %v2255_v22 = vadd.f32 %v2196_v20, %v2157_v9  ;;  %v2257_v47 = vadd.f32 %v2204_v39, %v2159_v48 }
 0x169   :  { %v1209_v57 = vsel %vm1202_vm14, %v1205_v5, %v1208_v13  ;;  %v2049_v59 = vsel %vm2042_vm5, %v2045_v8, %v2048_v14  ;;  %v4125_v43 = vrot.slane %v3869_v32, %v3850_v44  ;;  %v4126_v35 = vrot.slane %v3869_v32, %v3853_v54  ;;  %v4129_v44 = vld [vmem:[#allocation16_spill] sm:$0xff] }
 0x16a   :  { %v1210_v20 = vsel %vm1200_vm6, nan, %v1209_v57  ;;  %v2050_v21 = vsel %vm1200_vm6, nan, %v2049_v59  ;;  %v2260_v39 = vadd.f32 %v4127_v4, %v2162_v23  ;;  %v2261_v48 = vadd.f32 %v4128_v28, %v2163_v37 }
 0x16b   :  { %v2258_v55 = vadd.f32 %v4125_v43, %v2160_v19  ;;  %v2259_v46 = vadd.f32 %v4126_v35, %v2161_v49  ;;  %v1218_v19 = vmul.f32 %v1210_v20, %v4129_v44  ;;  %v2058_v9 = vmul.f32 %v2050_v21, %v4129_v44 }
 0x16c   :  { %v4130_v54 = vrot.slane %v3869_v32, %v3862_v26  ;;  %v2263_v63 = vadd.f32 %v4131_v17, %v2165_v3  ;;  %v2281_v38 = vcombine.low %v2249_v41, %v2250_v7  ;;  %v2282_v61 = vcombine.low %v2251_v51, %v2252_v6 }
 0x16d   :  { %v2283_v12 = vcombine.low %v2253_v15, %v2254_v45  ;;  %v4132_v30 = vunpack.c.0.s8 %v3895_v50  ;;  %v2158_v56 = vmul.f32 %v2102_v53, %v1218_v19  ;;  %v2166_v52 = vmul.f32 %v2134_v1, %v2058_v9 }
 0x16e   :  { %v2262_v60 = vadd.f32 %v4130_v54, %v2164_v16  ;;  %v2330_v0 = vcombine.low %v2257_v47, %v2258_v55  ;;  %v2331_v33 = vcombine.low %v2259_v46, %v2260_v39  ;;  %v4133_v26 = vrot.slane %v3844_v11, %v3872_v40 }
 0x16f   :  { %v2290_v42 = vsub.s32 %v4132_v30, %v4124_v31  ;;  %v4134_v2 = vrot.slane %v3869_v32, %v3872_v40 }
 0x170   :  { %v2332_v27 = vcombine.low %v2261_v48, %v2262_v60  ;;  %v2256_v10 = vadd.f32 %v4133_v26, %v2158_v56 }
 0x171   :  { %v2291_v62 = vrot.slane %v2281_v38, %v2290_v42  ;;  %v2298_v24 = vrot.slane %v2282_v61, %v2290_v42  ;;  %v2264_v18 = vadd.f32 %v4134_v2, %v2166_v52  ;;  %v2340_v29 = vrot.slane %v2330_v0, %v2290_v42 }
 0x172   :  { %v2347_v25 = vrot.slane %v2331_v33, %v2290_v42  ;;  %v2305_v49 = vrot.slane %v2283_v12, %v2290_v42  ;;  %v2284_v31 = vcombine.low %v2255_v22, %v2256_v10  ;;  %v2354_v1 = vrot.slane %v2332_v27, %v2290_v42 }
 0x173   :  { %v2313_v50 = vcombine.low %v2291_v62, %v2298_v24  ;;  %v2333_v53 = vcombine.low %v2263_v63, %v2264_v18 }
 0x174   :  { %v2362_v23 = vcombine.low %v2340_v29, %v2347_v25  ;;  %v2312_v37 = vrot.slane %v2284_v31, %v2290_v42 }
 0x175   :  { %v2361_v36 = vrot.slane %v2333_v53, %v2290_v42  ;;  %v2321_v16 = vrot.slane %v2313_v50, %v2290_v42 }
 0x176   :  { %v2314_v58 = vcombine.low %v2305_v49, %v2312_v37  ;;  %v2370_v41 = vrot.slane %v2362_v23, %v2290_v42 }
 0x177   :  { %v2363_v3 = vcombine.low %v2354_v1, %v2361_v36 }
 0x178   :  { %v2328_v11 = vrot.slane %v2314_v58, %v2290_v42 }
 0x179   :  { %v2377_v34 = vrot.slane %v2363_v3, %v2290_v42 }
 0x17a   :  { %v2329_v32 = vcombine.low %v2321_v16, %v2328_v11 }
 0x17b   :  { %v2378_v40 = vcombine.low %v2370_v41, %v2377_v34 }
 0x17c   :  { %2381 = vst [vmem:[#allocation8] sm:$0xff] %v2329_v32 }
 0x17d   :  { %2382 = vst [vmem:[#allocation8 + $0x8] sm:$0xff] %v2378_v40 }
 0x17e   :  { %2628 = shalt.err (!%p2625_p6)
}
 0x17f   :  { %s2629_s6 = scalar_lea.hbm %s4043_s3, 256 }
 0x180   :  { %p2630_p7 = scmp.ne.s32.totalorder %s4043_s3, %s2629_s6  ;;  %p2633_p8 = scmp.lt.u32.totalorder %s2629_s6, %s4043_s3 }
 0x182   :  { %p2635_p9 = pnand %p2633_p8, %p2630_p7 }
 0x184   :  { %2638 = shalt.err (!%p2635_p9)
}
 0x185   :  { %2392 = dma.vmem_to_hbm [thread:$0]  %s2390_s29, 256, %s4043_s3, [#allocation5]  }
 0x186   :  { %2643 = dma.done.wait [#allocation5], 256  }
 0x187   :  { %2644 = vsyncadd [#allocation5], 4294967040 }
 0x188   :  { %2396 = vsyncpa [#allocation4], 1 }
 0x189   :  { %2397 = vsyncpa [#allocation7], 1 }
 0x18a   :  { %2398 = vsyncpa [#allocation5], 1 }

</bundles_post_ra>
